<compile_context>
chip_gen: v7x
topology: tpu7x:2x2x1
jax: 0.10.0
libtpu: 0.0.40
codegen_flags: <defaults>
</compile_context>

<pallas_src>
import functools

import numpy as np
import jax
import jax.numpy as jnp
from jax.experimental import pallas as pl
from jax.experimental.pallas import tpu as pltpu


# ----------------------------------------------------------------------------- #
# Small helpers
# ----------------------------------------------------------------------------- #
def _round_up(x, m):
    return (x + m - 1) // m * m


def _pad_rows(x, rows, value=0):
    if x.shape[0] == rows:
        return x
    return jnp.pad(x, ((0, rows - x.shape[0]), (0, 0)), constant_values=value)


_VMEM_LIMIT = 48 * 1024 * 1024   # explicit; safe on v7x (64 MiB), raises v5e default


# ----------------------------------------------------------------------------- #
# Fused cam encoder + depth encoder + softmax lift
# ----------------------------------------------------------------------------- #
def _encode_lift_kernel(x_ref, w1_ref, b1_ref, cw2_ref, cb2_ref, dw2_ref, db2_ref,
                        expand_ref, tile_ref, o_ref, *, feat):
    """One (tm, Cin) pixel tile -> lane-dense (tm, D*C) lifted context tile.

    First encoder layer is a single fused matmul (cam.w1 || depth.w1); the depth
    softmax and the p (x) img outer product stay in VMEM/vregs; the outer product
    is built with two constant bf16 selection matmuls (hoisted to host)."""
    x = x_ref[...]                                            # (tm, Cin) bf16

    # fused first layer: one MXU push for cam + depth branches
    h = jnp.dot(x, w1_ref[...], preferred_element_type=jnp.float32) + b1_ref[...]
    h = jnp.maximum(h, 0.0).astype(jnp.bfloat16)              # (tm, 2F)
    hc = h[:, :feat]
    hd = h[:, feat:]

    img = jnp.dot(hc, cw2_ref[...], preferred_element_type=jnp.float32) + cb2_ref[...]
    logits = jnp.dot(hd, dw2_ref[...], preferred_element_type=jnp.float32) + db2_ref[...]

    # softmax over depth bins (f32 VPU/EUP math)
    m = jnp.max(logits, axis=-1, keepdims=True)
    e = jnp.exp(logits - m)
    p = e * pl.reciprocal(jnp.sum(e, axis=-1, keepdims=True), approx=True)

    # lane-dense outer product out[:, d*C + c] = p[:, d] * img[:, c]
    # (constant bf16 selection matrices passed from the host; bf16 MXU operands)
    p_wide = jnp.dot(p.astype(jnp.bfloat16), expand_ref[...],
                     preferred_element_type=jnp.float32)
    img_wide = jnp.dot(img.astype(jnp.bfloat16), tile_ref[...],
                       preferred_element_type=jnp.float32)
    o_ref[...] = (p_wide * img_wide).astype(o_ref.dtype)


def encode_and_lift(x, cam, dep, *, tm=1024):
    """x: (M, Cin) pixel slab -> (M, D*C) bf16 lifted context (pixel-major)."""
    M, Cin = x.shape
    F = cam['w1'].shape[1]
    C = cam['w2'].shape[1]
    D = dep['w2'].shape[1]
    DC = D * C

    # VMEM-aware tile clamp (live f32 intermediates + double-buffered I/O windows)
    per_row = (2 * Cin * 2) + (2 * F * 6) + ((C + D) * 4) + (2 * DC * 4) + (2 * DC * 2)
    budget = 24 << 20
    while tm > 256 and tm * per_row > budget:
        tm //= 2
    tm = min(tm, _round_up(M, 8))
    Mp = _round_up(M, tm)
    xp = _pad_rows(x.astype(jnp.bfloat16), Mp)

    # fused first-layer weights/biases (cam || depth)
    w1 = jnp.concatenate([cam['w1'], dep['w1']], axis=1).astype(jnp.bfloat16)
    b1 = jnp.concatenate([cam['b1'], dep['b1']]).reshape(1, 2 * F).astype(jnp.float32)

    # hoisted constant selection matrices (0/1 -> exact in bf16)
    j = np.arange(DC)
    expand_d = jnp.asarray((j[None, :] // C == np.arange(D)[:, None]), jnp.bfloat16)
    tile_c = jnp.asarray((j[None, :] % C == np.arange(C)[:, None]), jnp.bfloat16)

    grid = (Mp // tm,)
    out = pl.pallas_call(
        functools.partial(_encode_lift_kernel, feat=F),
        out_shape=jax.ShapeDtypeStruct((Mp, DC), jnp.bfloat16),
        grid_spec=pltpu.PrefetchScalarGridSpec(
            num_scalar_prefetch=0,
            grid=grid,
            in_specs=[pl.BlockSpec((tm, Cin), lambda i: (i, 0)),
                      pl.BlockSpec((Cin, 2 * F), lambda i: (0, 0)),
                      pl.BlockSpec((1, 2 * F), lambda i: (0, 0)),
                      pl.BlockSpec((F, C), lambda i: (0, 0)),
                      pl.BlockSpec((1, C), lambda i: (0, 0)),
                      pl.BlockSpec((F, D), lambda i: (0, 0)),
                      pl.BlockSpec((1, D), lambda i: (0, 0)),
                      pl.BlockSpec((D, DC), lambda i: (0, 0)),
                      pl.BlockSpec((C, DC), lambda i: (0, 0))],
            out_specs=pl.BlockSpec((tm, DC), lambda i: (i, 0))),
        compiler_params=pltpu.CompilerParams(
            dimension_semantics=("parallel",),
            vmem_limit_bytes=_VMEM_LIMIT),
    )(xp, w1, b1,
      cam['w2'].astype(jnp.bfloat16), cam['b2'].reshape(1, C).astype(jnp.float32),
      dep['w2'].astype(jnp.bfloat16), dep['b2'].reshape(1, D).astype(jnp.float32),
      expand_d, tile_c)
    return out[:M]


# ----------------------------------------------------------------------------- #
# Sorted voxel scatter-add ("splat")
# ----------------------------------------------------------------------------- #
def _voxel_scatter_kernel(blk_start_ref, blk_count_ref, idx_ref, feat_ref, o_ref):
    """Scatter-add of sorted point features into a (tv, C) voxel tile.

    Points are pre-sorted by voxel id; blk_start/blk_count give the point-block
    range owned by this voxel tile, so the one-hot matmul runs only for the few
    blocks that can contribute (everything else is pl.when-skipped)."""
    i = pl.program_id(0)
    k = pl.program_id(1)

    @pl.when(k == 0)
    def _():
        o_ref[...] = jnp.zeros_like(o_ref)

    @pl.when(k < blk_count_ref[i])
    def _():
        tv = o_ref.shape[0]
        v0 = i * tv
        idx_local = idx_ref[...] - v0                         # (1, tp) cheap shift
        vi = jax.lax.broadcasted_iota(jnp.int32, (tv, idx_local.shape[1]), 0)
        onehot = (vi == idx_local).astype(jnp.bfloat16)       # exact 0/1 in bf16
        o_ref[...] += jnp.dot(onehot, feat_ref[...],
                              preferred_element_type=jnp.float32)


def voxel_scatter_add(vox_idx, point_feats, n_voxels, *, tv=512, tp=2048):
    """vox_idx: (Np,) int32 (-1 = dropped); point_feats: (Np, C) -> (n_voxels, C) f32.

    Sorted scatter: points sorted by voxel id, per-voxel-tile point-block ranges
    scalar-prefetched and used for data-dependent index_maps + block skipping.
    grid = (voxel tiles [parallel], point blocks [reduction, last])."""
    Np, C = point_feats.shape
    tv = min(tv, _round_up(n_voxels, 8))
    Vp = _round_up(n_voxels, tv)
    tp = min(tp, _round_up(Np, 128))
    Npp = _round_up(Np, tp)
    n_vt = Vp // tv
    n_pb = Npp // tp

    # sort by voxel id so each voxel tile owns a contiguous point range
    order = jnp.argsort(vox_idx)
    idx_sorted = vox_idx[order].astype(jnp.int32)
    feat_sorted = point_feats[order].astype(jnp.bfloat16)
    if Npp > Np:
        # sentinel Vp keeps sortedness and never matches any voxel row
        idx_sorted = jnp.concatenate(
            [idx_sorted, jnp.full((Npp - Np,), Vp, jnp.int32)])
        feat_sorted = _pad_rows(feat_sorted, Npp)

    # per-voxel-tile point-block ranges (scalar prefetch)
    bounds = jnp.arange(n_vt + 1, dtype=jnp.int32) * tv
    pos = jnp.searchsorted(idx_sorted, bounds).astype(jnp.int32)
    lo, hi = pos[:-1], pos[1:]
    blk_start = jnp.minimum(lo // tp, n_pb - 1).astype(jnp.int32)
    blk_count = jnp.where(hi > lo, (hi - 1) // tp - lo // tp + 1, 0).astype(jnp.int32)

    idx2d = idx_sorted.reshape(1, Npp)

    def idx_map(i, k, s_ref, c_ref):
        kk = jnp.minimum(k, jnp.maximum(c_ref[i], 1) - 1)     # clamp -> repeat block,
        return (0, s_ref[i] + kk)                             # DMA skipped when equal

    def feat_map(i, k, s_ref, c_ref):
        kk = jnp.minimum(k, jnp.maximum(c_ref[i], 1) - 1)
        return (s_ref[i] + kk, 0)

    # TODO(synk): output is (tv, C) with C < 128 lanes -> masked stores; packing
    # several voxel rows per output row would make writeback lane-dense.
    out = pl.pallas_call(
        _voxel_scatter_kernel,
        out_shape=jax.ShapeDtypeStruct((Vp, C), jnp.float32),
        grid_spec=pltpu.PrefetchScalarGridSpec(
            num_scalar_prefetch=2,
            grid=(n_vt, n_pb),
            in_specs=[pl.BlockSpec((1, tp), idx_map),
                      pl.BlockSpec((tp, C), feat_map)],
            out_specs=pl.BlockSpec((tv, C), lambda i, k, s, c: (i, 0))),
        compiler_params=pltpu.CompilerParams(
            dimension_semantics=("parallel", "arbitrary"),
            vmem_limit_bytes=_VMEM_LIMIT),
    )(blk_start, blk_count, idx2d, feat_sorted)
    return out[:n_voxels]


# ----------------------------------------------------------------------------- #
# Fused multi_scale_voxel_fusion + BevEncode head
# ----------------------------------------------------------------------------- #
def _bev_head_kernel(x_ref, fw_ref, fb_ref, w1_ref, b1_ref, w2_ref, b2_ref, o_ref):
    x = x_ref[...]                                            # (tm, Ctot) bf16
    y = jnp.dot(x, fw_ref[...], preferred_element_type=jnp.float32) + fb_ref[...]
    h = jnp.dot(y.astype(jnp.bfloat16), w1_ref[...],
                preferred_element_type=jnp.float32) + b1_ref[...]
    h = jnp.maximum(h, 0.0).astype(jnp.bfloat16)
    o = jnp.dot(h, w2_ref[...], preferred_element_type=jnp.float32) + b2_ref[...]
    o_ref[...] = o.astype(o_ref.dtype)


def bev_head(x, fusion, bev, *, tm=1024):
    M, Ctot = x.shape
    C = fusion['w'].shape[1]
    H = bev['w1'].shape[1]
    outC = bev['w2'].shape[1]
    tm = min(tm, _round_up(M, 8))
    Mp = _round_up(M, tm)
    xp = _pad_rows(x.astype(jnp.bfloat16), Mp)
    grid = (Mp // tm,)
    out = pl.pallas_call(
        _bev_head_kernel,
        out_shape=jax.ShapeDtypeStruct((Mp, outC), jnp.float32),
        grid_spec=pltpu.PrefetchScalarGridSpec(
            num_scalar_prefetch=0,
            grid=grid,
            in_specs=[pl.BlockSpec((tm, Ctot), lambda i: (i, 0)),
                      pl.BlockSpec((Ctot, C), lambda i: (0, 0)),
                      pl.BlockSpec((1, C), lambda i: (0, 0)),
                      pl.BlockSpec((C, H), lambda i: (0, 0)),
                      pl.BlockSpec((1, H), lambda i: (0, 0)),
                      pl.BlockSpec((H, outC), lambda i: (0, 0)),
                      pl.BlockSpec((1, outC), lambda i: (0, 0))],
            out_specs=pl.BlockSpec((tm, outC), lambda i: (i, 0))),
        compiler_params=pltpu.CompilerParams(
            dimension_semantics=("parallel",),
            vmem_limit_bytes=_VMEM_LIMIT),
    )(xp,
      fusion['w'].astype(jnp.bfloat16), fusion['b'].reshape(1, C).astype(jnp.float32),
      bev['w1'].astype(jnp.bfloat16), bev['b1'].reshape(1, H).astype(jnp.float32),
      bev['w2'].astype(jnp.bfloat16), bev['b2'].reshape(1, outC).astype(jnp.float32))
    return out[:M]


# ----------------------------------------------------------------------------- #
# Plain-JAX glue (geometry, reshapes, parameter setup)
# ----------------------------------------------------------------------------- #
def gen_dx_bx(xbound, ybound, zbound):
    dx = [row[2] for row in (xbound, ybound, zbound)]
    bx = [row[0] + row[2] / 2.0 for row in (xbound, ybound, zbound)]
    nx = [int((row[1] - row[0]) / row[2]) for row in (xbound, ybound, zbound)]
    return dx, bx, nx


def create_frustums(cfg):
    # Frustum built directly in (fH, fW, D, 3) pixel-major-then-depth order so the
    # geometry matches the lifted-context point order (no big 6-D transpose).
    frustums = []
    ogfW, ogfH = cfg['input_size']
    for stage in cfg['input_stages']:
        stride = cfg['feat_strides'][stage]
        fH, fW = ogfH // stride, ogfW // stride
        ds = np.arange(cfg['dbound'][0], cfg['dbound'][1], cfg['dbound'][2],
                       dtype=np.float32)
        D = ds.shape[0]
        xs = np.linspace(0, ogfW - 1, fW, dtype=np.float32)
        ys = np.linspace(0, ogfH - 1, fH, dtype=np.float32)
        xg = np.broadcast_to(xs[None, :, None], (fH, fW, D))
        yg = np.broadcast_to(ys[:, None, None], (fH, fW, D))
        dg = np.broadcast_to(ds[None, None, :], (fH, fW, D))
        frustums.append(np.stack([xg, yg, dg], axis=-1))      # (fH, fW, D, 3)
    return frustums


def get_geometry(cfg, rots, trans, intrins, post_trans, post_rots):
    # TODO(synk): the `post_trans is None` warp-inverse branch and bev_aug_args
    # augmentation path are not exercised here (inputs provided / None in demo).
    geoms = []
    for frustum in cfg['frustums']:
        f = jnp.asarray(frustum)                                           # (H,W,D,3)
        pts = f[None, None] - post_trans[:, :, None, None, None, :]        # (B,N,H,W,D,3)
        pts = jnp.einsum('bnij,bnhwdj->bnhwdi', jnp.linalg.inv(post_rots), pts)
        pts = jnp.concatenate([pts[..., :2] * pts[..., 2:3], pts[..., 2:3]], axis=-1)
        combine = jnp.einsum('bnij,bnjk->bnik', rots, jnp.linalg.inv(intrins))
        pts = jnp.einsum('bnij,bnhwdj->bnhwdi', combine, pts)
        pts = pts + trans[:, :, None, None, None, :]
        geoms.append(pts)
    return geoms


def voxel_pooling(cfg, geom, point_feats, B):
    """geom: (B,N,H,W,D,3); point_feats: (B*N*H*W*D, C) -> (B*nx0*nx1*nz, C) f32.

    Flat voxel index is (b, x, y, z)-major so the (B, nx0, nx1, nz*C) BEV layout
    needed by the head is a pure reshape (channel order matches torch's
    cat(final.unbind(dim=2), 1) with bev_xy_transpose=True)."""
    Np, C = point_feats.shape
    nx0, nx1, nz = cfg['nx']
    dx = jnp.asarray(cfg['dx'], jnp.float32)
    bx = jnp.asarray(cfg['bx'], jnp.float32)
    g = geom.reshape(Np, 3)
    # torch .long() truncates toward zero -> jnp.trunc
    gi = jnp.trunc((g - (bx - dx / 2.0)) / dx).astype(jnp.int32)
    batch_ix = jnp.repeat(jnp.arange(B, dtype=jnp.int32), Np // B)
    kept = ((gi[:, 0] >= 0) & (gi[:, 0] < nx0) &
            (gi[:, 1] >= 0) & (gi[:, 1] < nx1) &
            (gi[:, 2] >= 0) & (gi[:, 2] < nz))
    flat = ((batch_ix * nx0 + gi[:, 0]) * nx1 + gi[:, 1]) * nz + gi[:, 2]
    flat = jnp.where(kept, flat, -1).astype(jnp.int32)
    return voxel_scatter_add(flat, point_feats, B * nx0 * nx1 * nz)


def init_params(key, cfg):
    Cin = cfg['input_channel']
    C = cfg['image_channel']
    D = cfg['depth_channel']
    outC = cfg['output_channel']
    nz = cfg['nx'][2]
    feat = 256
    nstage = len(cfg['input_stages'])
    ks = jax.random.split(key, 4 * nstage + 4)

    def nrm(k, shape, std=0.02):
        return jax.random.normal(k, shape, jnp.float32) * std

    params = {}
    for i, stage in enumerate(cfg['input_stages']):
        # TODO(synk): SimpleConvEncoder's definition (stacked 3x3 convs + norm) is
        # external to the snippet; approximated as conv1x1 -> ReLU -> conv1x1.
        params[f'cam_{stage}'] = dict(
            w1=nrm(ks[4 * i + 0], (Cin, feat)), b1=jnp.zeros((feat,), jnp.float32),
            w2=nrm(ks[4 * i + 1], (feat, C)), b2=jnp.zeros((C,), jnp.float32))
        params[f'depth_{stage}'] = dict(
            w1=nrm(ks[4 * i + 2], (Cin, feat)), b1=jnp.zeros((feat,), jnp.float32),
            w2=nrm(ks[4 * i + 3], (feat, D)), b2=jnp.zeros((D,), jnp.float32))
    # init_weights(): normal_init(std=0.01, bias=-4.595)
    params['fusion'] = dict(
        w=nrm(ks[4 * nstage + 0], (C * nstage * nz, C), std=0.01),
        b=jnp.full((C,), -4.595, jnp.float32))
    # TODO(synk): BevEncode (ResNet-18 trunk + upsample head) is external to the
    # snippet; approximated as a 2-layer pointwise head (spatial size preserved).
    params['bev'] = dict(
        w1=nrm(ks[4 * nstage + 1], (C, 64)), b1=jnp.zeros((64,), jnp.float32),
        w2=nrm(ks[4 * nstage + 2], (64, outC)), b2=jnp.zeros((outC,), jnp.float32))
    return params


def lss_forward(params, cfg, feats, rots, trans, intrins, post_trans, post_rots):
    B, N, _ = trans.shape
    D = cfg['depth_channel']
    C = cfg['image_channel']
    nx0, nx1, nz = cfg['nx']
    geoms = get_geometry(cfg, rots, trans, intrins, post_trans, post_rots)

    stage_bevs = []
    for si, stage in enumerate(cfg['input_stages']):
        x = feats[stage]                                      # NCHW: (B*N, Cin, fH, fW)
        BN, Cin, fH, fW = x.shape
        xr = jnp.transpose(x, (0, 2, 3, 1)).reshape(BN * fH * fW, Cin)

        # fused cam/depth encoders + softmax-lift: (M, D*C) bf16, pixel-major
        ctx = encode_and_lift(xr, params[f'cam_{stage}'], params[f'depth_{stage}'])
        # free reshape to (Np, C) — geometry was generated in the same
        # (b, n, h, w, d) order, so no 6-D transpose of the largest tensor.
        ctx_pts = ctx.reshape(BN * fH * fW * D, C)
        bev_vox = voxel_pooling(cfg, geoms[si], ctx_pts, B)   # (B*X0*X1*nz, C)
        # (b, x, y, z)-major flat index -> pure reshape, channel order z-major
        stage_bevs.append(bev_vox.reshape(B, nx0, nx1, nz * C))

    vox = jnp.concatenate(stage_bevs, axis=-1)                # (B, X0, X1, nz*C*nstages)
    Ctot = vox.shape[-1]
    vflat = vox.reshape(B * nx0 * nx1, Ctot)

    # fused multi_scale_voxel_fusion + BevEncode head (bf16 MXU; ~3e-3 rel vs f32)
    out = bev_head(vflat, params['fusion'], params['bev'])    # (B*X0*X1, outC)
    outC = cfg['output_channel']
    return out.reshape(B, nx0, nx1, outC).transpose(0, 3, 1, 2)   # back to NCHW


# ----------------------------------------------------------------------------- #
# Demo
# ----------------------------------------------------------------------------- #
if __name__ == "__main__":
    key = jax.random.PRNGKey(0)
    B, N = 1, 2                                               # 1 sample, 2 cameras

    cfg = dict(
        target_cameras=['cam_front', 'cam_back'],
        input_stages=[0],
        input_channel=32,
        image_channel=16,
        depth_channel=8,
        output_channel=8,
        input_size=(128, 64),        # (ogfW, ogfH)
        feat_strides=[8],
        xbound=[-8.0, 8.0, 1.0],
        ybound=[-8.0, 8.0, 1.0],
        zbound=[-10.0, 10.0, 20.0],
        dbound=[4.0, 12.0, 1.0],     # -> D = 8 depth bins (D*C = 128, lane-dense)
    )
    dx, bx, nx = gen_dx_bx(cfg['xbound'], cfg['ybound'], cfg['zbound'])
    cfg['dx'], cfg['bx'], cfg['nx'] = dx, bx, nx
    cfg['frustums'] = create_frustums(cfg)
    assert cfg['frustums'][0].shape[2] == cfg['depth_channel']

    k_param, k_feat = jax.random.split(key)
    params = init_params(k_param, cfg)

    fH = cfg['input_size'][1] // cfg['feat_strides'][0]       # 8
    fW = cfg['input_size'][0] // cfg['feat_strides'][0]       # 16
    feats = [jax.random.normal(k_feat, (B * N, cfg['input_channel'], fH, fW),
                               jnp.float32)]

    rots = jnp.tile(jnp.eye(3, dtype=jnp.float32)[None, None], (B, N, 1, 1))
    trans = jnp.tile(jnp.asarray([[0.5, -0.25, 0.0], [-0.5, 0.25, 0.0]],
                                 jnp.float32)[None], (B, 1, 1))
    intrin = jnp.asarray([[64.0, 0.0, 64.0],
                          [0.0, 32.0, 32.0],
                          [0.0, 0.0, 1.0]], jnp.float32)
    intrins = jnp.tile(intrin[None, None], (B, N, 1, 1))
    post_rots = jnp.tile(jnp.eye(3, dtype=jnp.float32)[None, None], (B, N, 1, 1))
    post_trans = jnp.zeros((B, N, 3), jnp.float32)

    bev = lss_forward(params, cfg, feats, rots, trans, intrins, post_trans, post_rots)
    bev = jax.block_until_ready(bev)
    assert bev.shape == (B, cfg['output_channel'], nx[0], nx[1]), bev.shape
    assert bool(jnp.all(jnp.isfinite(bev)))
    print("KERNEL_OK")
</pallas_src>

<mosaic_0001>
module attributes {stable_mosaic.version = 11 : i64} {
  func.func @_encode_lift_kernel(%arg0: i32, %arg1: memref<256x32xbf16, #tpu.memory_space<vmem>>, %arg2: memref<32x512xbf16, #tpu.memory_space<vmem>>, %arg3: memref<1x512xf32, #tpu.memory_space<vmem>>, %arg4: memref<256x16xbf16, #tpu.memory_space<vmem>>, %arg5: memref<1x16xf32, #tpu.memory_space<vmem>>, %arg6: memref<256x8xbf16, #tpu.memory_space<vmem>>, %arg7: memref<1x8xf32, #tpu.memory_space<vmem>>, %arg8: memref<8x128xbf16, #tpu.memory_space<vmem>>, %arg9: memref<16x128xbf16, #tpu.memory_space<vmem>>, %arg10: memref<256x128xbf16, #tpu.memory_space<vmem>>) attributes {dimension_semantics = [#tpu.dimension_semantics<parallel>], iteration_bounds = array<i64: 1>, scalar_prefetch = 0 : i64, scratch_operands = 0 : i64, tpu.core_type = #tpu.core_type<tc>, window_params = [{transform_indices = @transform_0, window_bounds = array<i64: 256, 32>}, {pipeline_mode = #tpu.pipeline_mode<synchronous>, transform_indices = @transform_1, window_bounds = array<i64: 32, 512>}, {pipeline_mode = #tpu.pipeline_mode<synchronous>, transform_indices = @transform_2, window_bounds = array<i64: 1, 512>}, {pipeline_mode = #tpu.pipeline_mode<synchronous>, transform_indices = @transform_3, window_bounds = array<i64: 256, 16>}, {pipeline_mode = #tpu.pipeline_mode<synchronous>, transform_indices = @transform_4, window_bounds = array<i64: 1, 16>}, {pipeline_mode = #tpu.pipeline_mode<synchronous>, transform_indices = @transform_5, window_bounds = array<i64: 256, 8>}, {pipeline_mode = #tpu.pipeline_mode<synchronous>, transform_indices = @transform_6, window_bounds = array<i64: 1, 8>}, {pipeline_mode = #tpu.pipeline_mode<synchronous>, transform_indices = @transform_7, window_bounds = array<i64: 8, 128>}, {pipeline_mode = #tpu.pipeline_mode<synchronous>, transform_indices = @transform_8, window_bounds = array<i64: 16, 128>}, {transform_indices = @transform_9, window_bounds = array<i64: 256, 128>}]} {
    %c0 = arith.constant 0 : index
    %c0_0 = arith.constant 0 : index
    %0 = vector.load %arg1[%c0, %c0_0] : memref<256x32xbf16, #tpu.memory_space<vmem>>, vector<256x32xbf16>
    %c0_1 = arith.constant 0 : index
    %c0_2 = arith.constant 0 : index
    %1 = vector.load %arg2[%c0_1, %c0_2] : memref<32x512xbf16, #tpu.memory_space<vmem>>, vector<32x512xbf16>
    %cst = arith.constant dense<0.000000e+00> : vector<256x512xf32>
    %2 = tpu.matmul %0, %1, %cst {dimension_numbers = #tpu.dot_dimension_numbers<[1], [0], [0], [1], [0, 0, 1, 1], [], []>} : vector<256x32xbf16>, vector<32x512xbf16>, vector<256x512xf32> -> vector<256x512xf32>
    %c0_3 = arith.constant 0 : index
    %c0_4 = arith.constant 0 : index
    %3 = vector.load %arg3[%c0_3, %c0_4] : memref<1x512xf32, #tpu.memory_space<vmem>>, vector<1x512xf32>
    %4 = vector.broadcast %3 : vector<1x512xf32> to vector<256x512xf32>
    %5 = arith.addf %2, %4 : vector<256x512xf32>
    %cst_5 = arith.constant 0.000000e+00 : f32
    %6 = vector.broadcast %cst_5 : f32 to vector<256x512xf32>
    %7 = arith.maximumf %5, %6 : vector<256x512xf32>
    %8 = arith.truncf %7 : vector<256x512xf32> to vector<256x512xbf16>
    %9 = vector.extract_strided_slice %8 {offsets = [0, 0], sizes = [256, 256], strides = [1, 1]} : vector<256x512xbf16> to vector<256x256xbf16>
    %10 = vector.extract_strided_slice %8 {offsets = [0, 256], sizes = [256, 256], strides = [1, 1]} : vector<256x512xbf16> to vector<256x256xbf16>
    %c0_6 = arith.constant 0 : index
    %c0_7 = arith.constant 0 : index
    %11 = vector.load %arg4[%c0_6, %c0_7] : memref<256x16xbf16, #tpu.memory_space<vmem>>, vector<256x16xbf16>
    %cst_8 = arith.constant dense<0.000000e+00> : vector<256x16xf32>
    %12 = tpu.matmul %9, %11, %cst_8 {dimension_numbers = #tpu.dot_dimension_numbers<[1], [0], [0], [1], [0, 0, 1, 1], [], []>} : vector<256x256xbf16>, vector<256x16xbf16>, vector<256x16xf32> -> vector<256x16xf32>
    %c0_9 = arith.constant 0 : index
    %c0_10 = arith.constant 0 : index
    %13 = vector.load %arg5[%c0_9, %c0_10] : memref<1x16xf32, #tpu.memory_space<vmem>>, vector<1x16xf32>
    %14 = vector.broadcast %13 : vector<1x16xf32> to vector<256x16xf32>
    %15 = arith.addf %12, %14 : vector<256x16xf32>
    %c0_11 = arith.constant 0 : index
    %c0_12 = arith.constant 0 : index
    %16 = vector.load %arg6[%c0_11, %c0_12] : memref<256x8xbf16, #tpu.memory_space<vmem>>, vector<256x8xbf16>
    %cst_13 = arith.constant dense<0.000000e+00> : vector<256x8xf32>
    %17 = tpu.matmul %10, %16, %cst_13 {dimension_numbers = #tpu.dot_dimension_numbers<[1], [0], [0], [1], [0, 0, 1, 1], [], []>} : vector<256x256xbf16>, vector<256x8xbf16>, vector<256x8xf32> -> vector<256x8xf32>
    %c0_14 = arith.constant 0 : index
    %c0_15 = arith.constant 0 : index
    %18 = vector.load %arg7[%c0_14, %c0_15] : memref<1x8xf32, #tpu.memory_space<vmem>>, vector<1x8xf32>
    %19 = vector.broadcast %18 : vector<1x8xf32> to vector<256x8xf32>
    %20 = arith.addf %17, %19 : vector<256x8xf32>
    %cst_16 = arith.constant dense<0xFF800000> : vector<256xf32>
    %21 = vector.multi_reduction <maximumf>, %20, %cst_16 [1] : vector<256x8xf32> to vector<256xf32>
    %22 = vector.shape_cast %21 : vector<256xf32> to vector<256x1xf32>
    %23 = vector.broadcast %22 : vector<256x1xf32> to vector<256x8xf32>
    %24 = arith.subf %20, %23 : vector<256x8xf32>
    %25 = math.exp %24 : vector<256x8xf32>
    %cst_17 = arith.constant dense<0.000000e+00> : vector<256xf32>
    %26 = vector.multi_reduction <add>, %25, %cst_17 [1] : vector<256x8xf32> to vector<256xf32>
    %27 = vector.shape_cast %26 : vector<256xf32> to vector<256x1xf32>
    %28 = tpu.reciprocal %27 {approx = true} : vector<256x1xf32> -> vector<256x1xf32>
    %29 = vector.broadcast %28 : vector<256x1xf32> to vector<256x8xf32>
    %30 = arith.mulf %25, %29 : vector<256x8xf32>
    %31 = arith.truncf %30 : vector<256x8xf32> to vector<256x8xbf16>
    %c0_18 = arith.constant 0 : index
    %c0_19 = arith.constant 0 : index
    %32 = vector.load %arg8[%c0_18, %c0_19] : memref<8x128xbf16, #tpu.memory_space<vmem>>, vector<8x128xbf16>
    %cst_20 = arith.constant dense<0.000000e+00> : vector<256x128xf32>
    %33 = tpu.matmul %31, %32, %cst_20 {dimension_numbers = #tpu.dot_dimension_numbers<[1], [0], [0], [1], [0, 0, 1, 1], [], []>} : vector<256x8xbf16>, vector<8x128xbf16>, vector<256x128xf32> -> vector<256x128xf32>
    %34 = arith.truncf %15 : vector<256x16xf32> to vector<256x16xbf16>
    %c0_21 = arith.constant 0 : index
    %c0_22 = arith.constant 0 : index
    %35 = vector.load %arg9[%c0_21, %c0_22] : memref<16x128xbf16, #tpu.memory_space<vmem>>, vector<16x128xbf16>
    %cst_23 = arith.constant dense<0.000000e+00> : vector<256x128xf32>
    %36 = tpu.matmul %34, %35, %cst_23 {dimension_numbers = #tpu.dot_dimension_numbers<[1], [0], [0], [1], [0, 0, 1, 1], [], []>} : vector<256x16xbf16>, vector<16x128xbf16>, vector<256x128xf32> -> vector<256x128xf32>
    %37 = arith.mulf %33, %36 : vector<256x128xf32>
    %38 = arith.truncf %37 : vector<256x128xf32> to vector<256x128xbf16>
    %c0_24 = arith.constant 0 : index
    %c0_25 = arith.constant 0 : index
    %39 = vector.load %arg10[%c0_24, %c0_25] : memref<256x128xbf16, #tpu.memory_space<vmem>>, vector<256x128xbf16>
    tpu.vector_store %arg10[%c0_24, %c0_25], %38 {strides = array<i32>} : memref<256x128xbf16, #tpu.memory_space<vmem>>, vector<256x128xbf16>,
    return
  }
  func.func @transform_0(%arg0: i32) -> (i32, i32) {
    %c0_i32 = arith.constant 0 : i32
    %c0_i32_0 = arith.constant 0 : i32
    return %arg0, %c0_i32 : i32, i32
  }
  func.func @transform_1(%arg0: i32) -> (i32, i32) {
    %c0_i32 = arith.constant 0 : i32
    %c0_i32_0 = arith.constant 0 : i32
    %c0_i32_1 = arith.constant 0 : i32
    return %c0_i32, %c0_i32_0 : i32, i32
  }
  func.func @transform_2(%arg0: i32) -> (i32, i32) {
    %c0_i32 = arith.constant 0 : i32
    %c0_i32_0 = arith.constant 0 : i32
    %c0_i32_1 = arith.constant 0 : i32
    return %c0_i32, %c0_i32_0 : i32, i32
  }
  func.func @transform_3(%arg0: i32) -> (i32, i32) {
    %c0_i32 = arith.constant 0 : i32
    %c0_i32_0 = arith.constant 0 : i32
    %c0_i32_1 = arith.constant 0 : i32
    return %c0_i32, %c0_i32_0 : i32, i32
  }
  func.func @transform_4(%arg0: i32) -> (i32, i32) {
    %c0_i32 = arith.constant 0 : i32
    %c0_i32_0 = arith.constant 0 : i32
    %c0_i32_1 = arith.constant 0 : i32
    return %c0_i32, %c0_i32_0 : i32, i32
  }
  func.func @transform_5(%arg0: i32) -> (i32, i32) {
    %c0_i32 = arith.constant 0 : i32
    %c0_i32_0 = arith.constant 0 : i32
    %c0_i32_1 = arith.constant 0 : i32
    return %c0_i32, %c0_i32_0 : i32, i32
  }
  func.func @transform_6(%arg0: i32) -> (i32, i32) {
    %c0_i32 = arith.constant 0 : i32
    %c0_i32_0 = arith.constant 0 : i32
    %c0_i32_1 = arith.constant 0 : i32
    return %c0_i32, %c0_i32_0 : i32, i32
  }
  func.func @transform_7(%arg0: i32) -> (i32, i32) {
    %c0_i32 = arith.constant 0 : i32
    %c0_i32_0 = arith.constant 0 : i32
    %c0_i32_1 = arith.constant 0 : i32
    return %c0_i32, %c0_i32_0 : i32, i32
  }
  func.func @transform_8(%arg0: i32) -> (i32, i32) {
    %c0_i32 = arith.constant 0 : i32
    %c0_i32_0 = arith.constant 0 : i32
    %c0_i32_1 = arith.constant 0 : i32
    return %c0_i32, %c0_i32_0 : i32, i32
  }
  func.func @transform_9(%arg0: i32) -> (i32, i32) {
    %c0_i32 = arith.constant 0 : i32
    %c0_i32_0 = arith.constant 0 : i32
    return %arg0, %c0_i32 : i32, i32
  }
}

</mosaic_0001>

<bundles_post_ra>
// kernel: tpu_custom_call.1
= control target key start
LH: loop header
LB: loop body
LE: loop exit
PB: predicated region body
PF: predicated region fallthrough
CT: control target
= control target key end

     0   :  { %v3286_v2 = vmov 0   ;;  %vm216_vm0 = vcmask 261120   ;;  %s4297_s0 = inlined_call_operand.vmem [shape: bf16[256,32], index: 0, kind: input, shape index: {}]   ;;  %s4298_s1 = inlined_call_operand.vmem [shape: bf16[32,512], index: 1, kind: input, shape index: {}]   ;;  %s4299_s2 = inlined_call_operand.vmem [shape: f32[1,512], index: 2, kind: input, shape index: {}]   ;;  %s4300_s3 = inlined_call_operand.vmem [shape: bf16[256,16], index: 3, kind: input, shape index: {}]   ;;  %s4301_s4 = inlined_call_operand.vmem [shape: f32[1,16], index: 4, kind: input, shape index: {}]   ;;  %s4302_s5 = inlined_call_operand.vmem [shape: bf16[256,8], index: 5, kind: input, shape index: {}]   ;;  %s4303_s6 = inlined_call_operand.vmem [shape: f32[1,8], index: 6, kind: input, shape index: {}]   ;;  %s4304_s7 = inlined_call_operand.vmem [shape: bf16[8,128], index: 7, kind: input, shape index: {}]   ;;  %s4305_s8 = inlined_call_operand.vmem [shape: bf16[16,128], index: 8, kind: input, shape index: {}]   ;;  %s4306_s9 = inlined_call_operand.hbm [shape: bf16[256,128], index: 9, kind: output, shape index: {}]  }
   0x1   :  { %v3073_v0 = vld [vmem:[%s4298_s1 + $0xc] ss:$16 sps:$4 sm:$0xff]   ;;  %v3075_v1 = vld [vmem:[%s4298_s1 + $0x8] ss:$16 sps:$4 sm:$0xff]   ;;  %490 = vmatprep.mubr.bf16.mxu1 %v3286_v2  ;;  %297 = vmatprep.mubr.bf16.mxu0 %v3286_v2  ;;  %v3357_v5 = vld [vmem:[%s4297_s0] sm:$0xff]  }
   0x2   :  { %458 = vmatprep.subr.bf16.mxu1 %v3073_v0  ;;  %v3076_v3 = vld [vmem:[%s4298_s1 + $0x2c] ss:$16 sps:$4 sm:$0xff]   ;;  %v3078_v4 = vld [vmem:[%s4298_s1 + $0x28] ss:$16 sps:$4 sm:$0xff]   ;;  %v3091_v7 = vld [vmem:[%s4302_s5 + $0x40] sm:$0xff]  }
   0x3   :  { %459 = vmatpush1.bf16.msra.mxu1 %v3075_v1  ;;  %v3365_v6 = vld [vmem:[%s4297_s0 + $0x8] sm:$0xff]   ;;  %v3092_v8 = vld [vmem:[%s4302_s5] sm:$0xff]   ;;  %v3385_v11 = vld [vmem:[%s4297_s0 + $0x10] sm:$0xff]  }
   0x4   :  { %460 = vmatprep.subr.bf16.mxu1 %v3076_v3  ;;  %v3095_v9 = vld [vmem:[%s4302_s5 + $0x48] sm:$0xff]   ;;  %v3099_v12 = vld [vmem:[%s4302_s5 + $0x50] sm:$0xff]   ;;  %v3101_v14 = vld [vmem:[%s4302_s5 + $0x58] sm:$0xff]  }
   0x5   :  { %v3096_v10 = vld [vmem:[%s4302_s5 + $0x8] sm:$0xff]   ;;  %v3100_v13 = vld [vmem:[%s4302_s5 + $0x10] sm:$0xff]   ;;  %v3102_v15 = vld [vmem:[%s4302_s5 + $0x18] sm:$0xff]  }
   0x6   :  { %v3103_v16 = vld [vmem:[%s4302_s5 + $0x60] sm:$0xff]   ;;  %v3408_v17 = vld [vmem:[%s4297_s0 + $0x18] sm:$0xff]   ;;  %v3105_v19 = vld [vmem:[%s4302_s5 + $0x68] sm:$0xff]  }
   0x7   :  { %461 = vmatpush1.bf16.msra.mxu1 %v3078_v4  ;;  %v3104_v18 = vld [vmem:[%s4302_s5 + $0x20] sm:$0xff]   ;;  %v3106_v20 = vld [vmem:[%s4302_s5 + $0x28] sm:$0xff]   ;;  %v3107_v21 = vld [vmem:[%s4302_s5 + $0x70] sm:$0xff]  }
   0x8   :  { %2854 = vmatprep.subr.bf16.mxu1 %v3091_v7  ;;  %v3428_v22 = vld [vmem:[%s4297_s0 + $0x20] sm:$0xff]   ;;  %v3108_v23 = vld [vmem:[%s4302_s5 + $0x30] sm:$0xff]   ;;  %v3109_v24 = vld [vmem:[%s4302_s5 + $0x78] sm:$0xff]  }
   0x9   :  { %v3110_v25 = vld [vmem:[%s4302_s5 + $0x38] sm:$0xff]   ;;  %v3445_v26 = vld [vmem:[%s4297_s0 + $0x28] sm:$0xff]  }
   0xa   :  { %2500 = vmatmul.mubr.msk.bf16.vlgmr.msra.gmra.mrb[0].mxu1 %vm216_vm0, %v3357_v5 }
   0xb   :  { %500 = vmatprep.mubr.bf16.mxu1 %v3286_v2  ;;  %2855 = vmatpush3.bf16.msra.mxu1 %v3092_v8 }
   0xc   :  { %2856 = vmatprep.subr.bf16.mxu1 %v3095_v9 }
   0xf   :  { %2857 = vmatpush3.bf16.msra.mxu1 %v3096_v10 }
  0x10   :  { %2858 = vmatprep.subr.bf16.mxu1 %v3099_v12 }
  0x12   :  { %2501 = vmatmul.mubr.msk.bf16.gmra.mrb[4].mxu1 %vm216_vm0, %v3365_v6 }
  0x13   :  { %510 = vmatprep.mubr.bf16.mxu1 %v3286_v2  ;;  %2859 = vmatpush3.bf16.msra.mxu1 %v3100_v13 }
  0x14   :  { %2860 = vmatprep.subr.bf16.mxu1 %v3101_v14 }
  0x17   :  { %2861 = vmatpush3.bf16.msra.mxu1 %v3102_v15 }
  0x18   :  { %2862 = vmatprep.subr.bf16.mxu1 %v3103_v16 }
  0x1a   :  { %2502 = vmatmul.mubr.msk.bf16.gmra.mrb[8].mxu1 %vm216_vm0, %v3385_v11 }
  0x1b   :  { %520 = vmatprep.mubr.bf16.mxu1 %v3286_v2  ;;  %2863 = vmatpush3.bf16.msra.mxu1 %v3104_v18 }
  0x1c   :  { %2864 = vmatprep.subr.bf16.mxu1 %v3105_v19 }
  0x1f   :  { %2865 = vmatpush3.bf16.msra.mxu1 %v3106_v20 }
  0x20   :  { %2866 = vmatprep.subr.bf16.mxu1 %v3107_v21 }
  0x22   :  { %2503 = vmatmul.mubr.msk.bf16.gmra.mrb[12].mxu1 %vm216_vm0, %v3408_v17 }
  0x23   :  { %530 = vmatprep.mubr.bf16.mxu1 %v3286_v2  ;;  %2867 = vmatpush3.bf16.msra.mxu1 %v3108_v23 }
  0x24   :  { %2868 = vmatprep.subr.bf16.mxu1 %v3109_v24 }
  0x27   :  { %2869 = vmatpush3.bf16.msra.mxu1 %v3110_v25 }
  0x2a   :  { %2504 = vmatmul.mubr.msk.bf16.gmra.mrb[16].mxu1 %vm216_vm0, %v3428_v22 }
  0x2b   :  { %540 = vmatprep.mubr.bf16.mxu1 %v3286_v2 }
  0x2c   :  { %14 = vsyncpa [#allocation3], 0  ;;  %v3453_v27 = vld [vmem:[%s4297_s0 + $0x30] sm:$0xff]   ;;  %v3461_v28 = vld [vmem:[%s4297_s0 + $0x38] sm:$0xff]   ;;  %v76_v41 = vlaneseq  ;;  %vm1435_vm1 = vcmask 64512   ;;  %vm1853_vm2 = vcmask 1043456  }
  0x2d   :  { %v3469_v29 = vld [vmem:[%s4297_s0 + $0x40] sm:$0xff]   ;;  %v3477_v30 = vld [vmem:[%s4297_s0 + $0x48] sm:$0xff]   ;;  %v3485_v31 = vld [vmem:[%s4297_s0 + $0x50] sm:$0xff]   ;;  %vm2042_vm3 = vcmask 130048  }
  0x2e   :  { %v3493_v32 = vld [vmem:[%s4297_s0 + $0x58] sm:$0xff]   ;;  %v3501_v33 = vld [vmem:[%s4297_s0 + $0x60] sm:$0xff]   ;;  %v3509_v34 = vld [vmem:[%s4297_s0 + $0x68] sm:$0xff]   ;;  %v3550_v42 = vshrl.u32 %v76_v41, 7 }
  0x2f   :  { %v3517_v35 = vld [vmem:[%s4297_s0 + $0x70] sm:$0xff]   ;;  %v3525_v36 = vld [vmem:[%s4297_s0 + $0x78] sm:$0xff]   ;;  %v3559_v44 = vld [vmem:[%s4299_s2] sm:$0xf] }
  0x30   :  { %v3111_v37 = vld [vmem:[%s4298_s1 + $0x4] ss:$16 sps:$4 sm:$0xff]   ;;  %v3113_v38 = vld [vmem:[%s4298_s1] ss:$16 sps:$4 sm:$0xff]   ;;  %v86_v43 = vsub.s32 2, %v3550_v42  ;;  %v90_v45 = vsub.s32 3, %v3550_v42 }
  0x31   :  { %265 = vmatprep.subr.bf16.mxu0 %v3111_v37  ;;  %v3114_v39 = vld [vmem:[%s4298_s1 + $0x24] ss:$16 sps:$4 sm:$0xff]   ;;  %v3116_v40 = vld [vmem:[%s4298_s1 + $0x20] ss:$16 sps:$4 sm:$0xff]   ;;  %v3119_v57 = vld [vmem:[%s4300_s3 + $0x48] sm:$0xff]  }
  0x32   :  { %2505 = vmatmul.mubr.msk.bf16.gmra.mrb[20].mxu1 %vm216_vm0, %v3445_v26  ;;  %266 = vmatpush1.bf16.msra.mxu0 %v3113_v38  ;;  %v3563_v46 = vrot.slane %v3559_v44, %v86_v43  ;;  %v3568_v47 = vrot.slane %v3559_v44, %v90_v45  ;;  %v3117_v55 = vld [vmem:[%s4300_s3 + $0x40] sm:$0xff]   ;;  %v3120_v63 = vld [vmem:[%s4300_s3 + $0x8] sm:$0xff]  }
  0x33   :  { %550 = vmatprep.mubr.bf16.mxu1 %v3286_v2  ;;  %267 = vmatprep.subr.bf16.mxu0 %v3114_v39  ;;  %v3118_v56 = vld [vmem:[%s4300_s3] sm:$0xff]  }
  0x36   :  { %268 = vmatpush1.bf16.msra.mxu0 %v3116_v40 }
  0x37   :  { %2742 = vmatprep.subr.bf16.mxu0 %v3117_v55 }
  0x39   :  { %2484 = vmatmul.mubr.msk.bf16.vlgmr.msra.gmra.mrb[0].mxu0 %vm216_vm0, %v3357_v5 }
  0x3a   :  { %2506 = vmatmul.mubr.msk.bf16.gmra.mrb[24].mxu1 %vm216_vm0, %v3453_v27  ;;  %307 = vmatprep.mubr.bf16.mxu0 %v3286_v2 }
  0x3b   :  { %560 = vmatprep.mubr.bf16.mxu1 %v3286_v2  ;;  %2743 = vmatpush3.bf16.msra.mxu0 %v3118_v56 }
  0x3c   :  { %2744 = vmatprep.subr.bf16.mxu0 %v3119_v57 }
  0x3f   :  { %2745 = vmatpush3.bf16.msra.mxu0 %v3120_v63 }
  0x41   :  { %2485 = vmatmul.mubr.msk.bf16.gmra.mrb[4].mxu0 %vm216_vm0, %v3365_v6 }
  0x42   :  { %2507 = vmatmul.mubr.msk.bf16.gmra.mrb[28].mxu1 %vm216_vm0, %v3461_v28  ;;  %317 = vmatprep.mubr.bf16.mxu0 %v3286_v2 }
  0x43   :  { %570 = vmatprep.mubr.bf16.mxu1 %v3286_v2 }
  0x49   :  { %2486 = vmatmul.mubr.msk.bf16.gmra.mrb[8].mxu0 %vm216_vm0, %v3385_v11 }
  0x4a   :  { %2508 = vmatmul.mubr.msk.bf16.gmra.mrb[32].mxu1 %vm216_vm0, %v3469_v29  ;;  %327 = vmatprep.mubr.bf16.mxu0 %v3286_v2 }
  0x4b   :  { %580 = vmatprep.mubr.bf16.mxu1 %v3286_v2 }
  0x51   :  { %2487 = vmatmul.mubr.msk.bf16.gmra.mrb[12].mxu0 %vm216_vm0, %v3408_v17 }
  0x52   :  { %2509 = vmatmul.mubr.msk.bf16.gmra.mrb[36].mxu1 %vm216_vm0, %v3477_v30  ;;  %337 = vmatprep.mubr.bf16.mxu0 %v3286_v2 }
  0x53   :  { %590 = vmatprep.mubr.bf16.mxu1 %v3286_v2 }
  0x59   :  { %2488 = vmatmul.mubr.msk.bf16.gmra.mrb[16].mxu0 %vm216_vm0, %v3428_v22 }
  0x5a   :  { %2510 = vmatmul.mubr.msk.bf16.gmra.mrb[40].mxu1 %vm216_vm0, %v3485_v31  ;;  %347 = vmatprep.mubr.bf16.mxu0 %v3286_v2 }
  0x5b   :  { %600 = vmatprep.mubr.bf16.mxu1 %v3286_v2 }
  0x61   :  { %2489 = vmatmul.mubr.msk.bf16.gmra.mrb[20].mxu0 %vm216_vm0, %v3445_v26 }
  0x62   :  { %2511 = vmatmul.mubr.msk.bf16.gmra.mrb[44].mxu1 %vm216_vm0, %v3493_v32  ;;  %357 = vmatprep.mubr.bf16.mxu0 %v3286_v2 }
  0x63   :  { %610 = vmatprep.mubr.bf16.mxu1 %v3286_v2 }
  0x69   :  { %2490 = vmatmul.mubr.msk.bf16.gmra.mrb[24].mxu0 %vm216_vm0, %v3453_v27 }
  0x6a   :  { %2512 = vmatmul.mubr.msk.bf16.gmra.mrb[48].mxu1 %vm216_vm0, %v3501_v33  ;;  %367 = vmatprep.mubr.bf16.mxu0 %v3286_v2 }
  0x6b   :  { %620 = vmatprep.mubr.bf16.mxu1 %v3286_v2 }
  0x71   :  { %2491 = vmatmul.mubr.msk.bf16.gmra.mrb[28].mxu0 %vm216_vm0, %v3461_v28 }
  0x72   :  { %2513 = vmatmul.mubr.msk.bf16.gmra.mrb[52].mxu1 %vm216_vm0, %v3509_v34  ;;  %377 = vmatprep.mubr.bf16.mxu0 %v3286_v2 }
  0x73   :  { %630 = vmatprep.mubr.bf16.mxu1 %v3286_v2 }
  0x79   :  { %2492 = vmatmul.mubr.msk.bf16.gmra.mrb[32].mxu0 %vm216_vm0, %v3469_v29 }
  0x7a   :  { %2514 = vmatmul.mubr.msk.bf16.gmra.mrb[56].mxu1 %vm216_vm0, %v3517_v35  ;;  %387 = vmatprep.mubr.bf16.mxu0 %v3286_v2 }
  0x7b   :  { %640 = vmatprep.mubr.bf16.mxu1 %v3286_v2 }
  0x81   :  { %2493 = vmatmul.mubr.msk.bf16.gmra.mrb[36].mxu0 %vm216_vm0, %v3477_v30 }
  0x82   :  { %2515 = vmatmul.mubr.msk.bf16.gmra.mrb[60].mxu1 %vm216_vm0, %v3525_v36  ;;  %397 = vmatprep.mubr.bf16.mxu0 %v3286_v2 }
  0x89   :  { %2494 = vmatmul.mubr.msk.bf16.gmra.mrb[40].mxu0 %vm216_vm0, %v3485_v31 }
  0x8a   :  { %407 = vmatprep.mubr.bf16.mxu0 %v3286_v2 }
  0x91   :  { %2495 = vmatmul.mubr.msk.bf16.gmra.mrb[44].mxu0 %vm216_vm0, %v3493_v32 }
  0x92   :  { %417 = vmatprep.mubr.bf16.mxu0 %v3286_v2 }
  0x99   :  { %2496 = vmatmul.mubr.msk.bf16.gmra.mrb[48].mxu0 %vm216_vm0, %v3501_v33 }
  0x9a   :  { %427 = vmatprep.mubr.bf16.mxu0 %v3286_v2 }
  0xa1   :  { %2497 = vmatmul.mubr.msk.bf16.gmra.mrb[52].mxu0 %vm216_vm0, %v3509_v34 }
  0xa2   :  { %437 = vmatprep.mubr.bf16.mxu0 %v3286_v2 }
  0xa9   :  { %2498 = vmatmul.mubr.msk.bf16.gmra.mrb[56].mxu0 %vm216_vm0, %v3517_v35 }
  0xaa   :  { %447 = vmatprep.mubr.bf16.mxu0 %v3286_v2 }
  0xb1   :  { %2499 = vmatmul.mubr.msk.bf16.gmra.mrb[60].mxu0 %vm216_vm0, %v3525_v36 }
  0xdd   :  { %v492_v48 = vpop.f32.mrb[0].mxu1 }
  0xde   :  { %v493_v49 = vadd.f32 %v492_v48, %v3563_v46  ;;  %v494_v50 = vpop.f32.mrb[1].mxu1 }
  0xdf   :  { %v495_v51 = vadd.f32 %v494_v50, %v3568_v47  ;;  %v496_v52 = vpop.f32.mrb[2].mxu1 }
  0xe0   :  { %v497_v53 = vadd.f32 %v496_v52, %v3563_v46  ;;  %v498_v54 = vpop.f32.mrb[3].mxu1  ;;  %v653_v59 = vmax.f32 %v493_v49, 0.0 }
  0xe1   :  { %v499_v58 = vadd.f32 %v498_v54, %v3568_v47  ;;  %v654_v61 = vmax.f32 %v495_v51, 0.0 }
  0xe2   :  { %v657_v60 = vmax.f32 %v497_v53, 0.0 }
  0xe3   :  { %v658_v62 = vmax.f32 %v499_v58, 0.0 }
  0xe4   :  { %v781_v0 = vpack.c.bf16 %v657_v60, %v653_v59 }
  0xe5   :  { %v782_v1 = vpack.c.bf16 %v658_v62, %v654_v61  ;;  %v502_v3 = vpop.f32.mrb[4].mxu1 }
  0xe6   :  { %v503_v4 = vadd.f32 %v502_v3, %v3563_v46  ;;  %v504_v5 = vpop.f32.mrb[5].mxu1 }
  0xe7   :  { %v505_v6 = vadd.f32 %v504_v5, %v3568_v47  ;;  %v506_v7 = vpop.f32.mrb[6].mxu1  ;;  %1306 = vmatprep.mubr.bf16.mxu1 %v782_v1 }
  0xe8   :  { %v507_v8 = vadd.f32 %v506_v7, %v3563_v46  ;;  %v508_v9 = vpop.f32.mrb[7].mxu1  ;;  %1307 = vmatmul.mubr.bf16.vlgmr.msra.gmra.mrb[64].mxu1 %v781_v0  ;;  %v661_v11 = vmax.f32 %v503_v4, 0.0 }
  0xe9   :  { %v509_v10 = vadd.f32 %v508_v9, %v3568_v47  ;;  %v662_v13 = vmax.f32 %v505_v6, 0.0 }
  0xea   :  { %v665_v12 = vmax.f32 %v507_v8, 0.0 }
  0xeb   :  { %v666_v14 = vmax.f32 %v509_v10, 0.0 }
  0xec   :  { %v785_v15 = vpack.c.bf16 %v665_v12, %v661_v11 }
  0xed   :  { %v786_v16 = vpack.c.bf16 %v666_v14, %v662_v13  ;;  %v512_v17 = vpop.f32.mrb[8].mxu1 }
  0xee   :  { %v513_v18 = vadd.f32 %v512_v17, %v3563_v46  ;;  %v514_v19 = vpop.f32.mrb[9].mxu1 }
  0xef   :  { %v515_v20 = vadd.f32 %v514_v19, %v3568_v47  ;;  %v516_v21 = vpop.f32.mrb[10].mxu1  ;;  %1314 = vmatprep.mubr.bf16.mxu1 %v786_v16 }
  0xf0   :  { %v517_v22 = vadd.f32 %v516_v21, %v3563_v46  ;;  %v518_v23 = vpop.f32.mrb[11].mxu1  ;;  %1315 = vmatmul.mubr.bf16.gmra.mrb[68].mxu1 %v785_v15  ;;  %v669_v25 = vmax.f32 %v513_v18, 0.0 }
  0xf1   :  { %v519_v24 = vadd.f32 %v518_v23, %v3568_v47  ;;  %v670_v27 = vmax.f32 %v515_v20, 0.0 }
  0xf2   :  { %v673_v26 = vmax.f32 %v517_v22, 0.0 }
  0xf3   :  { %v674_v37 = vmax.f32 %v519_v24, 0.0 }
  0xf4   :  { %v789_v38 = vpack.c.bf16 %v673_v26, %v669_v25 }
  0xf5   :  { %v790_v39 = vpack.c.bf16 %v674_v37, %v670_v27  ;;  %v522_v40 = vpop.f32.mrb[12].mxu1 }
  0xf6   :  { %v523_v41 = vadd.f32 %v522_v40, %v3563_v46  ;;  %v524_v43 = vpop.f32.mrb[13].mxu1 }
  0xf7   :  { %v525_v45 = vadd.f32 %v524_v43, %v3568_v47  ;;  %v526_v48 = vpop.f32.mrb[14].mxu1  ;;  %1322 = vmatprep.mubr.bf16.mxu1 %v790_v39 }
  0xf8   :  { %v527_v49 = vadd.f32 %v526_v48, %v3563_v46  ;;  %v528_v50 = vpop.f32.mrb[15].mxu1  ;;  %1323 = vmatmul.mubr.bf16.gmra.mrb[72].mxu1 %v789_v38  ;;  %v677_v51 = vmax.f32 %v523_v41, 0.0 }
  0xf9   :  { %v529_v28 = vadd.f32 %v528_v50, %v3568_v47  ;;  %v678_v53 = vmax.f32 %v525_v45, 0.0 }
  0xfa   :  { %v681_v52 = vmax.f32 %v527_v49, 0.0 }
  0xfb   :  { %v682_v54 = vmax.f32 %v529_v28, 0.0 }
  0xfc   :  { %v793_v55 = vpack.c.bf16 %v681_v52, %v677_v51 }
  0xfd   :  { %v794_v56 = vpack.c.bf16 %v682_v54, %v678_v53  ;;  %v532_v57 = vpop.f32.mrb[16].mxu1 }
  0xfe   :  { %v533_v58 = vadd.f32 %v532_v57, %v3563_v46  ;;  %v534_v59 = vpop.f32.mrb[17].mxu1 }
  0xff   :  { %v535_v60 = vadd.f32 %v534_v59, %v3568_v47  ;;  %v536_v61 = vpop.f32.mrb[18].mxu1  ;;  %1330 = vmatprep.mubr.bf16.mxu1 %v794_v56 }
 0x100   :  { %v537_v62 = vadd.f32 %v536_v61, %v3563_v46  ;;  %v538_v63 = vpop.f32.mrb[19].mxu1  ;;  %1331 = vmatmul.mubr.bf16.gmra.mrb[76].mxu1 %v793_v55  ;;  %v685_v0 = vmax.f32 %v533_v58, 0.0 }
 0x101   :  { %v539_v29 = vadd.f32 %v538_v63, %v3568_v47  ;;  %v686_v3 = vmax.f32 %v535_v60, 0.0 }
 0x102   :  { %v689_v1 = vmax.f32 %v537_v62, 0.0 }
 0x103   :  { %v690_v4 = vmax.f32 %v539_v29, 0.0 }
 0x104   :  { %v797_v5 = vpack.c.bf16 %v689_v1, %v685_v0 }
 0x105   :  { %v798_v6 = vpack.c.bf16 %v690_v4, %v686_v3  ;;  %v542_v7 = vpop.f32.mrb[20].mxu1 }
 0x106   :  { %v543_v8 = vadd.f32 %v542_v7, %v3563_v46  ;;  %v544_v9 = vpop.f32.mrb[21].mxu1 }
 0x107   :  { %v545_v10 = vadd.f32 %v544_v9, %v3568_v47  ;;  %v546_v11 = vpop.f32.mrb[22].mxu1  ;;  %1338 = vmatprep.mubr.bf16.mxu1 %v798_v6 }
 0x108   :  { %v547_v12 = vadd.f32 %v546_v11, %v3563_v46  ;;  %v548_v13 = vpop.f32.mrb[23].mxu1  ;;  %1339 = vmatmul.mubr.bf16.gmra.mrb[80].mxu1 %v797_v5  ;;  %v693_v14 = vmax.f32 %v543_v8, 0.0 }
 0x109   :  { %v549_v30 = vadd.f32 %v548_v13, %v3568_v47  ;;  %v694_v16 = vmax.f32 %v545_v10, 0.0 }
 0x10a   :  { %v697_v15 = vmax.f32 %v547_v12, 0.0 }
 0x10b   :  { %v698_v17 = vmax.f32 %v549_v30, 0.0 }
 0x10c   :  { %v801_v18 = vpack.c.bf16 %v697_v15, %v693_v14 }
 0x10d   :  { %v802_v19 = vpack.c.bf16 %v698_v17, %v694_v16  ;;  %v552_v20 = vpop.f32.mrb[24].mxu1 }
 0x10e   :  { %v553_v21 = vadd.f32 %v552_v20, %v3563_v46  ;;  %v554_v22 = vpop.f32.mrb[25].mxu1 }
 0x10f   :  { %v555_v23 = vadd.f32 %v554_v22, %v3568_v47  ;;  %v556_v24 = vpop.f32.mrb[26].mxu1  ;;  %1346 = vmatprep.mubr.bf16.mxu1 %v802_v19 }
 0x110   :  { %v557_v25 = vadd.f32 %v556_v24, %v3563_v46  ;;  %v558_v26 = vpop.f32.mrb[27].mxu1  ;;  %1347 = vmatmul.mubr.bf16.gmra.mrb[84].mxu1 %v801_v18  ;;  %v701_v27 = vmax.f32 %v553_v21, 0.0 }
 0x111   :  { %v559_v31 = vadd.f32 %v558_v26, %v3568_v47  ;;  %v702_v38 = vmax.f32 %v555_v23, 0.0 }
 0x112   :  { %v705_v37 = vmax.f32 %v557_v25, 0.0 }
 0x113   :  { %v706_v39 = vmax.f32 %v559_v31, 0.0 }
 0x114   :  { %v805_v40 = vpack.c.bf16 %v705_v37, %v701_v27 }
 0x115   :  { %v806_v41 = vpack.c.bf16 %v706_v39, %v702_v38  ;;  %v562_v43 = vpop.f32.mrb[28].mxu1 }
 0x116   :  { %v563_v45 = vadd.f32 %v562_v43, %v3563_v46  ;;  %v564_v48 = vpop.f32.mrb[29].mxu1 }
 0x117   :  { %v565_v49 = vadd.f32 %v564_v48, %v3568_v47  ;;  %v566_v50 = vpop.f32.mrb[30].mxu1  ;;  %1354 = vmatprep.mubr.bf16.mxu1 %v806_v41 }
 0x118   :  { %v567_v28 = vadd.f32 %v566_v50, %v3563_v46  ;;  %v568_v51 = vpop.f32.mrb[31].mxu1  ;;  %1355 = vmatmul.mubr.bf16.gmra.mrb[88].mxu1 %v805_v40  ;;  %v709_v52 = vmax.f32 %v563_v45, 0.0 }
 0x119   :  { %v569_v32 = vadd.f32 %v568_v51, %v3568_v47  ;;  %v710_v54 = vmax.f32 %v565_v49, 0.0 }
 0x11a   :  { %v713_v53 = vmax.f32 %v567_v28, 0.0 }
 0x11b   :  { %v714_v55 = vmax.f32 %v569_v32, 0.0 }
 0x11c   :  { %v809_v56 = vpack.c.bf16 %v713_v53, %v709_v52 }
 0x11d   :  { %v810_v57 = vpack.c.bf16 %v714_v55, %v710_v54  ;;  %v572_v58 = vpop.f32.mrb[32].mxu1 }
 0x11e   :  { %v573_v59 = vadd.f32 %v572_v58, %v3563_v46  ;;  %v574_v60 = vpop.f32.mrb[33].mxu1 }
 0x11f   :  { %v575_v61 = vadd.f32 %v574_v60, %v3568_v47  ;;  %v576_v62 = vpop.f32.mrb[34].mxu1  ;;  %1362 = vmatprep.mubr.bf16.mxu1 %v810_v57 }
 0x120   :  { %v577_v63 = vadd.f32 %v576_v62, %v3563_v46  ;;  %v578_v29 = vpop.f32.mrb[35].mxu1  ;;  %1363 = vmatmul.mubr.bf16.gmra.mrb[92].mxu1 %v809_v56  ;;  %v717_v0 = vmax.f32 %v573_v59, 0.0  ;;  %v3121_v59 = vld [vmem:[%s4300_s3 + $0x50] sm:$0xff]  }
 0x121   :  { %v579_v33 = vadd.f32 %v578_v29, %v3568_v47  ;;  %v718_v3 = vmax.f32 %v575_v61, 0.0  ;;  %2746 = vmatprep.subr.bf16.mxu0 %v3121_v59  ;;  %v299_v59 = vpop.f32.mrb[0].mxu0 }
 0x122   :  { %v721_v1 = vmax.f32 %v577_v63, 0.0 }
 0x123   :  { %v722_v4 = vmax.f32 %v579_v33, 0.0  ;;  %v3122_v33 = vld [vmem:[%s4300_s3 + $0x10] sm:$0xff]  }
 0x124   :  { %v813_v5 = vpack.c.bf16 %v721_v1, %v717_v0  ;;  %2747 = vmatpush3.bf16.msra.mxu0 %v3122_v33  ;;  %v3131_v33 = vld [vmem:[%s4300_s3 + $0x78] sm:$0xff]  }
 0x125   :  { %v814_v6 = vpack.c.bf16 %v722_v4, %v718_v3  ;;  %v582_v7 = vpop.f32.mrb[36].mxu1 }
 0x126   :  { %v583_v8 = vadd.f32 %v582_v7, %v3563_v46  ;;  %v584_v9 = vpop.f32.mrb[37].mxu1 }
 0x127   :  { %v585_v10 = vadd.f32 %v584_v9, %v3568_v47  ;;  %v586_v11 = vpop.f32.mrb[38].mxu1  ;;  %1370 = vmatprep.mubr.bf16.mxu1 %v814_v6 }
 0x128   :  { %v587_v12 = vadd.f32 %v586_v11, %v3563_v46  ;;  %v588_v13 = vpop.f32.mrb[39].mxu1  ;;  %1371 = vmatmul.mubr.bf16.gmra.mrb[96].mxu1 %v813_v5  ;;  %v725_v30 = vmax.f32 %v583_v8, 0.0 }
 0x129   :  { %v589_v34 = vadd.f32 %v588_v13, %v3568_v47  ;;  %v726_v15 = vmax.f32 %v585_v10, 0.0 }
 0x12a   :  { %v729_v14 = vmax.f32 %v587_v12, 0.0 }
 0x12b   :  { %v730_v16 = vmax.f32 %v589_v34, 0.0 }
 0x12c   :  { %v817_v17 = vpack.c.bf16 %v729_v14, %v725_v30 }
 0x12d   :  { %v818_v18 = vpack.c.bf16 %v730_v16, %v726_v15  ;;  %v592_v19 = vpop.f32.mrb[40].mxu1 }
 0x12e   :  { %v593_v20 = vadd.f32 %v592_v19, %v3563_v46  ;;  %v594_v21 = vpop.f32.mrb[41].mxu1 }
 0x12f   :  { %v595_v22 = vadd.f32 %v594_v21, %v3568_v47  ;;  %v596_v23 = vpop.f32.mrb[42].mxu1  ;;  %1378 = vmatprep.mubr.bf16.mxu1 %v818_v18 }
 0x130   :  { %v597_v24 = vadd.f32 %v596_v23, %v3563_v46  ;;  %v598_v25 = vpop.f32.mrb[43].mxu1  ;;  %1379 = vmatmul.mubr.bf16.gmra.mrb[100].mxu1 %v817_v17  ;;  %v733_v26 = vmax.f32 %v593_v20, 0.0 }
 0x131   :  { %v599_v35 = vadd.f32 %v598_v25, %v3568_v47  ;;  %v734_v2 = vmax.f32 %v595_v22, 0.0  ;;  %v3123_v22 = vld [vmem:[%s4300_s3 + $0x58] sm:$0xff]  }
 0x132   :  { %v737_v31 = vmax.f32 %v597_v24, 0.0  ;;  %2748 = vmatprep.subr.bf16.mxu0 %v3123_v22 }
 0x133   :  { %v738_v27 = vmax.f32 %v599_v35, 0.0 }
 0x134   :  { %v821_v37 = vpack.c.bf16 %v737_v31, %v733_v26  ;;  %v3124_v31 = vld [vmem:[%s4300_s3 + $0x18] sm:$0xff]  }
 0x135   :  { %v822_v38 = vpack.c.bf16 %v738_v27, %v734_v2  ;;  %v602_v39 = vpop.f32.mrb[44].mxu1  ;;  %2749 = vmatpush3.bf16.msra.mxu0 %v3124_v31 }
 0x136   :  { %v603_v40 = vadd.f32 %v602_v39, %v3563_v46  ;;  %v604_v41 = vpop.f32.mrb[45].mxu1 }
 0x137   :  { %v605_v43 = vadd.f32 %v604_v41, %v3568_v47  ;;  %v606_v45 = vpop.f32.mrb[46].mxu1  ;;  %1386 = vmatprep.mubr.bf16.mxu1 %v822_v38 }
 0x138   :  { %v607_v48 = vadd.f32 %v606_v45, %v3563_v46  ;;  %v608_v49 = vpop.f32.mrb[47].mxu1  ;;  %1387 = vmatmul.mubr.bf16.gmra.mrb[104].mxu1 %v821_v37  ;;  %v741_v28 = vmax.f32 %v603_v40, 0.0 }
 0x139   :  { %v609_v50 = vadd.f32 %v608_v49, %v3568_v47  ;;  %v742_v51 = vmax.f32 %v605_v43, 0.0 }
 0x13a   :  { %v745_v36 = vmax.f32 %v607_v48, 0.0 }
 0x13b   :  { %v746_v32 = vmax.f32 %v609_v50, 0.0 }
 0x13c   :  { %v825_v52 = vpack.c.bf16 %v745_v36, %v741_v28 }
 0x13d   :  { %v826_v53 = vpack.c.bf16 %v746_v32, %v742_v51  ;;  %v612_v54 = vpop.f32.mrb[48].mxu1 }
 0x13e   :  { %v613_v55 = vadd.f32 %v612_v54, %v3563_v46  ;;  %v614_v56 = vpop.f32.mrb[49].mxu1  ;;  %v3125_v54 = vld [vmem:[%s4300_s3 + $0x60] sm:$0xff]  }
 0x13f   :  { %v615_v57 = vadd.f32 %v614_v56, %v3568_v47  ;;  %v616_v58 = vpop.f32.mrb[50].mxu1  ;;  %1394 = vmatprep.mubr.bf16.mxu1 %v826_v53  ;;  %2750 = vmatprep.subr.bf16.mxu0 %v3125_v54  ;;  %v3129_v56 = vld [vmem:[%s4300_s3 + $0x70] sm:$0xff]  }
 0x140   :  { %v617_v60 = vadd.f32 %v616_v58, %v3563_v46  ;;  %v618_v61 = vpop.f32.mrb[51].mxu1  ;;  %1395 = vmatmul.mubr.bf16.gmra.mrb[108].mxu1 %v825_v52  ;;  %v749_v63 = vmax.f32 %v613_v55, 0.0  ;;  %v3128_v55 = vld [vmem:[%s4300_s3 + $0x28] sm:$0xff]   ;;  %v78_v58 = vsub.s32 0, %v3550_v42 }
 0x141   :  { %v619_v62 = vadd.f32 %v618_v61, %v3568_v47  ;;  %v750_v0 = vmax.f32 %v615_v57, 0.0  ;;  %v3130_v57 = vld [vmem:[%s4300_s3 + $0x30] sm:$0xff]   ;;  %v301_v61 = vpop.f32.mrb[1].mxu0 }
 0x142   :  { %v753_v29 = vmax.f32 %v617_v60, 0.0  ;;  %v82_v60 = vsub.s32 1, %v3550_v42 }
 0x143   :  { %v754_v1 = vmax.f32 %v619_v62, 0.0  ;;  %v3712_v62 = vrot.slane %v3559_v44, %v78_v58 }
 0x144   :  { %v829_v3 = vpack.c.bf16 %v753_v29, %v749_v63  ;;  %v3715_v63 = vrot.slane %v3559_v44, %v82_v60  ;;  %v303_v29 = vpop.f32.mrb[2].mxu0  ;;  %v3132_v44 = vld [vmem:[%s4300_s3 + $0x38] sm:$0xff]  }
 0x145   :  { %v830_v4 = vpack.c.bf16 %v754_v1, %v750_v0  ;;  %v622_v5 = vpop.f32.mrb[52].mxu1  ;;  %v305_v0 = vpop.f32.mrb[3].mxu0  ;;  %v300_v1 = vadd.f32 %v299_v59, %v3712_v62 }
 0x146   :  { %v623_v6 = vadd.f32 %v622_v5, %v3563_v46  ;;  %v624_v7 = vpop.f32.mrb[53].mxu1  ;;  %v306_v42 = vadd.f32 %v305_v0, %v3715_v63 }
 0x147   :  { %v625_v8 = vadd.f32 %v624_v7, %v3568_v47  ;;  %v626_v9 = vpop.f32.mrb[54].mxu1  ;;  %1402 = vmatprep.mubr.bf16.mxu1 %v830_v4  ;;  %v304_v4 = vadd.f32 %v303_v29, %v3712_v62  ;;  %v651_v5 = vmax.f32 %v300_v1, 0.0 }
 0x148   :  { %v627_v10 = vadd.f32 %v626_v9, %v3563_v46  ;;  %v628_v11 = vpop.f32.mrb[55].mxu1  ;;  %1403 = vmatmul.mubr.bf16.gmra.mrb[112].mxu1 %v829_v3  ;;  %v757_v13 = vmax.f32 %v623_v6, 0.0  ;;  %v302_v3 = vadd.f32 %v301_v61, %v3715_v63 }
 0x149   :  { %v629_v12 = vadd.f32 %v628_v11, %v3568_v47  ;;  %v758_v30 = vmax.f32 %v625_v8, 0.0  ;;  %v655_v7 = vmax.f32 %v304_v4, 0.0  ;;  %v656_v8 = vmax.f32 %v306_v42, 0.0  ;;  %v309_v11 = vpop.f32.mrb[4].mxu0 }
 0x14a   :  { %v761_v34 = vmax.f32 %v627_v10, 0.0  ;;  %v652_v6 = vmax.f32 %v302_v3, 0.0 }
 0x14b   :  { %v762_v14 = vmax.f32 %v629_v12, 0.0  ;;  %v779_v9 = vpack.c.bf16 %v655_v7, %v651_v5  ;;  %v310_v12 = vadd.f32 %v309_v11, %v3712_v62 }
 0x14c   :  { %v833_v15 = vpack.c.bf16 %v761_v34, %v757_v13  ;;  %v780_v10 = vpack.c.bf16 %v656_v8, %v652_v6  ;;  %v311_v13 = vpop.f32.mrb[5].mxu0 }
 0x14d   :  { %v834_v16 = vpack.c.bf16 %v762_v14, %v758_v30  ;;  %v632_v17 = vpop.f32.mrb[56].mxu1  ;;  %v312_v34 = vadd.f32 %v311_v13, %v3715_v63  ;;  %v313_v30 = vpop.f32.mrb[6].mxu0  ;;  %v659_v14 = vmax.f32 %v310_v12, 0.0 }
 0x14e   :  { %v633_v18 = vadd.f32 %v632_v17, %v3563_v46  ;;  %v634_v19 = vpop.f32.mrb[57].mxu1  ;;  %1010 = vmatprep.mubr.bf16.mxu0 %v780_v10 }
 0x14f   :  { %v635_v20 = vadd.f32 %v634_v19, %v3568_v47  ;;  %v636_v21 = vpop.f32.mrb[58].mxu1  ;;  %1410 = vmatprep.mubr.bf16.mxu1 %v834_v16  ;;  %v315_v16 = vpop.f32.mrb[7].mxu0  ;;  %v660_v17 = vmax.f32 %v312_v34, 0.0 }
 0x150   :  { %v637_v23 = vadd.f32 %v636_v21, %v3563_v46  ;;  %v638_v24 = vpop.f32.mrb[59].mxu1  ;;  %1411 = vmatmul.mubr.bf16.gmra.mrb[116].mxu1 %v833_v15  ;;  %v765_v35 = vmax.f32 %v633_v18, 0.0  ;;  %v314_v15 = vadd.f32 %v313_v30, %v3712_v62  ;;  %v316_v18 = vadd.f32 %v315_v16, %v3715_v63 }
 0x151   :  { %v639_v25 = vadd.f32 %v638_v24, %v3568_v47  ;;  %v766_v2 = vmax.f32 %v635_v20, 0.0 }
 0x152   :  { %v769_v26 = vmax.f32 %v637_v23, 0.0  ;;  %v663_v19 = vmax.f32 %v314_v15, 0.0  ;;  %v664_v20 = vmax.f32 %v316_v18, 0.0  ;;  %v319_v23 = vpop.f32.mrb[8].mxu0 }
 0x153   :  { %v770_v27 = vmax.f32 %v639_v25, 0.0  ;;  %v320_v24 = vadd.f32 %v319_v23, %v3712_v62  ;;  %v321_v25 = vpop.f32.mrb[9].mxu0 }
 0x154   :  { %v837_v37 = vpack.c.bf16 %v769_v26, %v765_v35  ;;  %v783_v21 = vpack.c.bf16 %v663_v19, %v659_v14  ;;  %v784_v22 = vpack.c.bf16 %v664_v20, %v660_v17  ;;  %v322_v35 = vadd.f32 %v321_v25, %v3715_v63  ;;  %v323_v26 = vpop.f32.mrb[10].mxu0  ;;  %v3750_v17 = vld [vmem:[%s4303_s6] ss:$0 sm:$0xff] }
 0x155   :  { %v838_v38 = vpack.c.bf16 %v770_v27, %v766_v2  ;;  %v642_v39 = vpop.f32.mrb[60].mxu1  ;;  %v667_v31 = vmax.f32 %v320_v24, 0.0  ;;  %v324_v2 = vadd.f32 %v323_v26, %v3712_v62  ;;  %v325_v27 = vpop.f32.mrb[11].mxu0 }
 0x156   :  { %v643_v40 = vadd.f32 %v642_v39, %v3563_v46  ;;  %v644_v41 = vpop.f32.mrb[61].mxu1 }
 0x157   :  { %v645_v43 = vadd.f32 %v644_v41, %v3568_v47  ;;  %v646_v45 = vpop.f32.mrb[62].mxu1  ;;  %1418 = vmatprep.mubr.bf16.mxu1 %v838_v38  ;;  %v326_v38 = vadd.f32 %v325_v27, %v3715_v63  ;;  %v671_v39 = vmax.f32 %v324_v2, 0.0 }
 0x158   :  { %v647_v48 = vadd.f32 %v646_v45, %v3563_v46  ;;  %v648_v49 = vpop.f32.mrb[63].mxu1  ;;  %1419 = vmatmul.mubr.bf16.gmra.mrb[120].mxu1 %v837_v37  ;;  %v773_v28 = vmax.f32 %v643_v40, 0.0  ;;  %v3126_v46 = vld [vmem:[%s4300_s3 + $0x20] sm:$0xff]   ;;  %v668_v37 = vmax.f32 %v322_v35, 0.0  ;;  %v329_v45 = vpop.f32.mrb[12].mxu0 }
 0x159   :  { %v649_v50 = vadd.f32 %v648_v49, %v3568_v47  ;;  %v774_v51 = vmax.f32 %v645_v43, 0.0  ;;  %2751 = vmatpush3.bf16.msra.mxu0 %v3126_v46  ;;  %v3127_v47 = vld [vmem:[%s4300_s3 + $0x68] sm:$0xff]   ;;  %v672_v40 = vmax.f32 %v326_v38, 0.0  ;;  %v787_v41 = vpack.c.bf16 %v671_v39, %v667_v31  ;;  %v331_v49 = vpop.f32.mrb[13].mxu0 }
 0x15a   :  { %v777_v36 = vmax.f32 %v647_v48, 0.0  ;;  %2752 = vmatprep.subr.bf16.mxu0 %v3127_v47  ;;  %v330_v48 = vadd.f32 %v329_v45, %v3712_v62 }
 0x15b   :  { %v778_v32 = vmax.f32 %v649_v50, 0.0  ;;  %v788_v43 = vpack.c.bf16 %v672_v40, %v668_v37  ;;  %v332_v50 = vadd.f32 %v331_v49, %v3715_v63 }
 0x15c   :  { %v841_v52 = vpack.c.bf16 %v777_v36, %v773_v28  ;;  %v333_v28 = vpop.f32.mrb[14].mxu0  ;;  %v675_v36 = vmax.f32 %v330_v48, 0.0 }
 0x15d   :  { %v842_v53 = vpack.c.bf16 %v778_v32, %v774_v51  ;;  %2753 = vmatpush3.bf16.msra.mxu0 %v3128_v55  ;;  %v334_v51 = vadd.f32 %v333_v28, %v3712_v62  ;;  %v335_v32 = vpop.f32.mrb[15].mxu0 }
 0x15e   :  { %2754 = vmatprep.subr.bf16.mxu0 %v3129_v56  ;;  %v339_v56 = vpop.f32.mrb[16].mxu0 }
 0x15f   :  { %1426 = vmatprep.mubr.bf16.mxu1 %v842_v53  ;;  %v336_v53 = vadd.f32 %v335_v32, %v3715_v63  ;;  %v679_v54 = vmax.f32 %v334_v51, 0.0  ;;  %v341_v58 = vpop.f32.mrb[17].mxu0 }
 0x160   :  { %1427 = vmatmul.mubr.bf16.gmra.mrb[124].mxu1 %v841_v52  ;;  %v676_v52 = vmax.f32 %v332_v50, 0.0  ;;  %v342_v59 = vadd.f32 %v341_v58, %v3715_v63  ;;  %v343_v60 = vpop.f32.mrb[18].mxu0 }
 0x161   :  { %2755 = vmatpush3.bf16.msra.mxu0 %v3130_v57  ;;  %v680_v46 = vmax.f32 %v336_v53, 0.0  ;;  %v791_v47 = vpack.c.bf16 %v679_v54, %v675_v36  ;;  %v340_v57 = vadd.f32 %v339_v56, %v3712_v62  ;;  %v344_v29 = vadd.f32 %v343_v60, %v3712_v62 }
 0x162   :  { %2756 = vmatprep.subr.bf16.mxu0 %v3131_v33  ;;  %v345_v33 = vpop.f32.mrb[19].mxu0  ;;  %v684_v0 = vmax.f32 %v342_v59, 0.0 }
 0x163   :  { %v792_v55 = vpack.c.bf16 %v680_v46, %v676_v52  ;;  %v683_v61 = vmax.f32 %v340_v57, 0.0  ;;  %v346_v1 = vadd.f32 %v345_v33, %v3715_v63  ;;  %v687_v3 = vmax.f32 %v344_v29, 0.0  ;;  %v349_v5 = vpop.f32.mrb[20].mxu0 }
 0x164   :  { %v350_v6 = vadd.f32 %v349_v5, %v3712_v62  ;;  %v351_v7 = vpop.f32.mrb[21].mxu0 }
 0x165   :  { %2757 = vmatpush3.bf16.msra.mxu0 %v3132_v44  ;;  %v688_v4 = vmax.f32 %v346_v1, 0.0  ;;  %v795_v42 = vpack.c.bf16 %v687_v3, %v683_v61  ;;  %v352_v8 = vadd.f32 %v351_v7, %v3715_v63 }
 0x166   :  { %v691_v10 = vmax.f32 %v350_v6, 0.0 }
 0x167   :  { %v796_v44 = vpack.c.bf16 %v688_v4, %v684_v0  ;;  %v692_v13 = vmax.f32 %v352_v8, 0.0 }
 0x168   :  { %1011 = vmatmul.mubr.bf16.vlgmr.msra.gmra.mrb[64].mxu0 %v779_v9  ;;  %v353_v9 = vpop.f32.mrb[22].mxu0 }
 0x169   :  { %1018 = vmatprep.mubr.bf16.mxu0 %v784_v22  ;;  %v354_v11 = vadd.f32 %v353_v9, %v3712_v62  ;;  %v355_v12 = vpop.f32.mrb[23].mxu0 }
 0x16a   :  { %v356_v34 = vadd.f32 %v355_v12, %v3715_v63  ;;  %v359_v22 = vpop.f32.mrb[24].mxu0 }
 0x16b   :  { %v695_v30 = vmax.f32 %v354_v11, 0.0  ;;  %v360_v24 = vadd.f32 %v359_v22, %v3712_v62  ;;  %v361_v25 = vpop.f32.mrb[25].mxu0 }
 0x16c   :  { %v696_v15 = vmax.f32 %v356_v34, 0.0  ;;  %v362_v31 = vadd.f32 %v361_v25, %v3715_v63  ;;  %v363_v2 = vpop.f32.mrb[26].mxu0 }
 0x16d   :  { %v799_v18 = vpack.c.bf16 %v695_v30, %v691_v10  ;;  %v699_v27 = vmax.f32 %v360_v24, 0.0  ;;  %v364_v37 = vadd.f32 %v363_v2, %v3712_v62  ;;  %v365_v38 = vpop.f32.mrb[27].mxu0 }
 0x16e   :  { %v369_v53 = vpop.f32.mrb[28].mxu0 }
 0x16f   :  { %v703_v45 = vmax.f32 %v364_v37, 0.0  ;;  %v370_v46 = vadd.f32 %v369_v53, %v3712_v62 }
 0x170   :  { %1019 = vmatmul.mubr.bf16.gmra.mrb[68].mxu0 %v783_v21  ;;  %v800_v21 = vpack.c.bf16 %v696_v15, %v692_v13 }
 0x171   :  { %1026 = vmatprep.mubr.bf16.mxu0 %v788_v43  ;;  %v366_v43 = vadd.f32 %v365_v38, %v3715_v63  ;;  %v803_v28 = vpack.c.bf16 %v703_v45, %v699_v27  ;;  %v707_v59 = vmax.f32 %v370_v46, 0.0 }
 0x173   :  { %v704_v49 = vmax.f32 %v366_v43, 0.0 }
 0x178   :  { %1027 = vmatmul.mubr.bf16.gmra.mrb[72].mxu0 %v787_v41  ;;  %v700_v41 = vmax.f32 %v362_v31, 0.0 }
 0x179   :  { %1034 = vmatprep.mubr.bf16.mxu0 %v792_v55 }
 0x17a   :  { %v804_v52 = vpack.c.bf16 %v704_v49, %v700_v41 }
 0x180   :  { %1035 = vmatmul.mubr.bf16.gmra.mrb[76].mxu0 %v791_v47  ;;  %v371_v47 = vpop.f32.mrb[29].mxu0 }
 0x181   :  { %1042 = vmatprep.mubr.bf16.mxu0 %v796_v44  ;;  %v372_v57 = vadd.f32 %v371_v47, %v3715_v63  ;;  %v373_v58 = vpop.f32.mrb[30].mxu0 }
 0x182   :  { %v374_v60 = vadd.f32 %v373_v58, %v3712_v62  ;;  %v375_v61 = vpop.f32.mrb[31].mxu0 }
 0x183   :  { %v708_v0 = vmax.f32 %v372_v57, 0.0  ;;  %v376_v1 = vadd.f32 %v375_v61, %v3715_v63  ;;  %v379_v10 = vpop.f32.mrb[32].mxu0 }
 0x184   :  { %v711_v3 = vmax.f32 %v374_v60, 0.0  ;;  %v380_v12 = vadd.f32 %v379_v10, %v3712_v62  ;;  %v381_v13 = vpop.f32.mrb[33].mxu0 }
 0x185   :  { %v383_v15 = vpop.f32.mrb[34].mxu0 }
 0x186   :  { %v807_v5 = vpack.c.bf16 %v711_v3, %v707_v59  ;;  %v715_v22 = vmax.f32 %v380_v12, 0.0 }
 0x188   :  { %1043 = vmatmul.mubr.bf16.gmra.mrb[80].mxu0 %v795_v42  ;;  %v712_v42 = vmax.f32 %v376_v1, 0.0 }
 0x189   :  { %1050 = vmatprep.mubr.bf16.mxu0 %v800_v21 }
 0x18a   :  { %v808_v9 = vpack.c.bf16 %v712_v42, %v708_v0 }
 0x190   :  { %1051 = vmatmul.mubr.bf16.gmra.mrb[84].mxu0 %v799_v18 }
 0x191   :  { %1058 = vmatprep.mubr.bf16.mxu0 %v804_v52 }
 0x198   :  { %1059 = vmatmul.mubr.bf16.gmra.mrb[88].mxu0 %v803_v28 }
 0x199   :  { %1066 = vmatprep.mubr.bf16.mxu0 %v808_v9 }
 0x1a0   :  { %1067 = vmatmul.mubr.bf16.gmra.mrb[92].mxu0 %v807_v5 }
 0x1bb   :  { %v2870_v14 = vpop.f32.mrb[64].mxu1 }
 0x1bc   :  { %v2871_v16 = vpop.f32.mrb[65].mxu1 }
 0x1bd   :  { %v2872_v19 = vadd.f32 %v2871_v16, %v2870_v14  ;;  %v2873_v20 = vpop.f32.mrb[66].mxu1  ;;  %v382_v14 = vadd.f32 %v381_v13, %v3715_v63  ;;  %v385_v16 = vpop.f32.mrb[35].mxu0 }
 0x1be   :  { %v2874_v23 = vpop.f32.mrb[67].mxu1  ;;  %v386_v21 = vadd.f32 %v385_v16, %v3715_v63 }
 0x1bf   :  { %v2875_v35 = vadd.f32 %v2874_v23, %v2873_v20  ;;  %v3754_v26 = vadd.f32 %v2872_v19, %v3750_v17  ;;  %v716_v20 = vmax.f32 %v382_v14, 0.0  ;;  %v384_v23 = vadd.f32 %v383_v15, %v3712_v62 }
 0x1c1   :  { %v1436_v39 = vsel %vm1435_vm1, %v3754_v26, -inf  ;;  %v3761_v40 = vadd.f32 %v2875_v35, %v3750_v17  ;;  %v720_v35 = vmax.f32 %v386_v21, 0.0  ;;  %v719_v2 = vmax.f32 %v384_v23, 0.0 }
 0x1c2   :  { %1437 = vmax.xlane.f32.xlu0 %v1436_v39  ;;  %v389_v39 = vpop.f32.mrb[36].mxu0 }
 0x1c3   :  { %v2876_v48 = vpop.f32.mrb[68].mxu1  ;;  %v1439_v32 = vsel %vm1435_vm1, %v3761_v40, -inf  ;;  %v812_v38 = vpack.c.bf16 %v720_v35, %v716_v20  ;;  %v811_v43 = vpack.c.bf16 %v719_v2, %v715_v22  ;;  %v391_v45 = vpop.f32.mrb[37].mxu0  ;;  %v390_v28 = vadd.f32 %v389_v39, %v3712_v62 }
 0x1c4   :  { %v2877_v50 = vpop.f32.mrb[69].mxu1 }
 0x1c5   :  { %v2878_v36 = vadd.f32 %v2877_v50, %v2876_v48  ;;  %v2879_v51 = vpop.f32.mrb[70].mxu1  ;;  %v393_v50 = vpop.f32.mrb[38].mxu0  ;;  %1074 = vmatprep.mubr.bf16.mxu0 %v812_v38 }
 0x1c6   :  { %v2880_v54 = vpop.f32.mrb[71].mxu1  ;;  %1440 = vmax.xlane.f32.xlu0 %v1439_v32  ;;  %1075 = vmatmul.mubr.bf16.gmra.mrb[96].mxu0 %v811_v43  ;;  %v394_v47 = vadd.f32 %v393_v50, %v3712_v62 }
 0x1c7   :  { %v2881_v55 = vadd.f32 %v2880_v54, %v2879_v51  ;;  %v3768_v56 = vadd.f32 %v2878_v36, %v3750_v17  ;;  %v392_v36 = vadd.f32 %v391_v45, %v3715_v63  ;;  %v395_v51 = vpop.f32.mrb[39].mxu0  ;;  %v723_v54 = vmax.f32 %v390_v28, 0.0 }
 0x1c8   :  { %v396_v53 = vadd.f32 %v395_v51, %v3715_v63  ;;  %v727_v60 = vmax.f32 %v394_v47, 0.0  ;;  %v399_v1 = vpop.f32.mrb[40].mxu0 }
 0x1c9   :  { %v1442_v29 = vsel %vm1435_vm1, %v3768_v56, -inf  ;;  %v3775_v33 = vadd.f32 %v2881_v55, %v3750_v17  ;;  %v724_v46 = vmax.f32 %v392_v36, 0.0  ;;  %v401_v42 = vpop.f32.mrb[41].mxu0 }
 0x1ca   :  { %1443 = vmax.xlane.f32.xlu1 %v1442_v29  ;;  %v728_v58 = vmax.f32 %v396_v53, 0.0 }
 0x1cb   :  { %v2882_v4 = vpop.f32.mrb[72].mxu1  ;;  %v1445_v8 = vsel %vm1435_vm1, %v3775_v33, -inf }
 0x1cc   :  { %v2883_v44 = vpop.f32.mrb[73].mxu1  ;;  %v816_v0 = vpack.c.bf16 %v728_v58, %v724_v46 }
 0x1cd   :  { %v2884_v6 = vadd.f32 %v2883_v44, %v2882_v4  ;;  %v2885_v7 = vpop.f32.mrb[74].mxu1  ;;  %v815_v4 = vpack.c.bf16 %v727_v60, %v723_v54 }
 0x1ce   :  { %v2886_v11 = vpop.f32.mrb[75].mxu1  ;;  %1446 = vmax.xlane.f32.xlu1 %v1445_v8  ;;  %1082 = vmatprep.mubr.bf16.mxu0 %v816_v0  ;;  %v402_v8 = vadd.f32 %v401_v42, %v3715_v63 }
 0x1cf   :  { %v2887_v34 = vadd.f32 %v2886_v11, %v2885_v7  ;;  %v3782_v30 = vadd.f32 %v2884_v6, %v3750_v17  ;;  %v403_v6 = vpop.f32.mrb[42].mxu0  ;;  %v400_v7 = vadd.f32 %v399_v1, %v3712_v62  ;;  %1083 = vmatmul.mubr.bf16.gmra.mrb[100].mxu0 %v815_v4 }
 0x1d0   :  { %v405_v9 = vpop.f32.mrb[43].mxu0  ;;  %v404_v14 = vadd.f32 %v403_v6, %v3712_v62 }
 0x1d1   :  { %v1448_v18 = vsel %vm1435_vm1, %v3782_v30, -inf  ;;  %v3788_v19 = vadd.f32 %v2887_v34, %v3750_v17  ;;  %v406_v12 = vadd.f32 %v405_v9, %v3715_v63  ;;  %v731_v13 = vmax.f32 %v400_v7, 0.0 }
 0x1d2   :  { %1449 = vmax.xlane.f32.xlu0 %v1448_v18  ;;  %v732_v34 = vmax.f32 %v402_v8, 0.0  ;;  %v735_v21 = vmax.f32 %v404_v14, 0.0 }
 0x1d3   :  { %v2888_v24 = vpop.f32.mrb[76].mxu1  ;;  %v1451_v25 = vsel %vm1435_vm1, %v3788_v19, -inf  ;;  %v736_v18 = vmax.f32 %v406_v12, 0.0 }
 0x1d4   :  { %v2889_v31 = vpop.f32.mrb[77].mxu1  ;;  %1452 = vmax.xlane.f32.xlu1 %v1451_v25  ;;  %v409_v25 = vpop.f32.mrb[44].mxu0 }
 0x1d5   :  { %v2890_v27 = vadd.f32 %v2889_v31, %v2888_v24  ;;  %v2891_v37 = vpop.f32.mrb[78].mxu1  ;;  %v820_v24 = vpack.c.bf16 %v736_v18, %v732_v34  ;;  %v819_v31 = vpack.c.bf16 %v735_v21, %v731_v13  ;;  %v410_v2 = vadd.f32 %v409_v25, %v3712_v62 }
 0x1d6   :  { %v2892_v41 = vpop.f32.mrb[79].mxu1 }
 0x1d7   :  { %v2893_v48 = vadd.f32 %v2892_v41, %v2891_v37  ;;  %v3795_v49 = vadd.f32 %v2890_v27, %v3750_v17  ;;  %v411_v27 = vpop.f32.mrb[45].mxu0  ;;  %1090 = vmatprep.mubr.bf16.mxu0 %v820_v24  ;;  %v739_v36 = vmax.f32 %v410_v2, 0.0 }
 0x1d8   :  { %v412_v39 = vadd.f32 %v411_v27, %v3715_v63  ;;  %v413_v41 = vpop.f32.mrb[46].mxu0  ;;  %1091 = vmatmul.mubr.bf16.gmra.mrb[104].mxu0 %v819_v31 }
 0x1d9   :  { %v1454_v32 = vsel %vm1435_vm1, %v3795_v49, -inf  ;;  %v3802_v52 = vadd.f32 %v2893_v48, %v3750_v17  ;;  %v415_v43 = vpop.f32.mrb[47].mxu0  ;;  %v414_v51 = vadd.f32 %v413_v41, %v3712_v62 }
 0x1da   :  { %1455 = vmax.xlane.f32.xlu0 %v1454_v32  ;;  %v740_v50 = vmax.f32 %v412_v39, 0.0  ;;  %v416_v28 = vadd.f32 %v415_v43, %v3715_v63 }
 0x1db   :  { %v2894_v55 = vpop.f32.mrb[80].mxu1  ;;  %v1457_v57 = vsel %vm1435_vm1, %v3802_v52, -inf  ;;  %v743_v47 = vmax.f32 %v414_v51, 0.0 }
 0x1dc   :  { %v2895_v59 = vpop.f32.mrb[81].mxu1  ;;  %1458 = vmax.xlane.f32.xlu1 %v1457_v57  ;;  %v744_v54 = vmax.f32 %v416_v28, 0.0 }
 0x1dd   :  { %v2896_v61 = vadd.f32 %v2895_v59, %v2894_v55  ;;  %v2897_v29 = vpop.f32.mrb[82].mxu1  ;;  %v419_v59 = vpop.f32.mrb[48].mxu0 }
 0x1de   :  { %v2898_v3 = vpop.f32.mrb[83].mxu1  ;;  %v824_v58 = vpack.c.bf16 %v744_v54, %v740_v50  ;;  %v421_v0 = vpop.f32.mrb[49].mxu0 }
 0x1df   :  { %v2899_v44 = vadd.f32 %v2898_v3, %v2897_v29  ;;  %v3809_v5 = vadd.f32 %v2896_v61, %v3750_v17  ;;  %v823_v61 = vpack.c.bf16 %v743_v47, %v739_v36  ;;  %v420_v29 = vadd.f32 %v419_v59, %v3712_v62  ;;  %v423_v42 = vpop.f32.mrb[50].mxu0 }
 0x1e0   :  { %v422_v4 = vadd.f32 %v421_v0, %v3715_v63  ;;  %1098 = vmatprep.mubr.bf16.mxu0 %v824_v58  ;;  %v424_v12 = vadd.f32 %v423_v42, %v3712_v62 }
 0x1e1   :  { %v1460_v10 = vsel %vm1435_vm1, %v3809_v5, -inf  ;;  %v3816_v11 = vadd.f32 %v2899_v44, %v3750_v17  ;;  %v425_v44 = vpop.f32.mrb[51].mxu0  ;;  %1099 = vmatmul.mubr.bf16.gmra.mrb[108].mxu0 %v823_v61 }
 0x1e2   :  { %1461 = vmax.xlane.f32.xlu0 %v1460_v10  ;;  %v748_v8 = vmax.f32 %v422_v4, 0.0  ;;  %v426_v9 = vadd.f32 %v425_v44, %v3715_v63  ;;  %v747_v10 = vmax.f32 %v420_v29, 0.0 }
 0x1e3   :  { %v2900_v15 = vpop.f32.mrb[84].mxu1  ;;  %v1463_v16 = vsel %vm1435_vm1, %v3816_v11, -inf }
 0x1e4   :  { %v2901_v20 = vpop.f32.mrb[85].mxu1  ;;  %1464 = vmax.xlane.f32.xlu1 %v1463_v16  ;;  %v752_v14 = vmax.f32 %v426_v9, 0.0  ;;  %v751_v16 = vmax.f32 %v424_v12, 0.0 }
 0x1e5   :  { %v2902_v22 = vadd.f32 %v2901_v20, %v2900_v15  ;;  %v2903_v23 = vpop.f32.mrb[86].mxu1 }
 0x1e6   :  { %v2904_v35 = vpop.f32.mrb[87].mxu1  ;;  %v828_v21 = vpack.c.bf16 %v752_v14, %v748_v8  ;;  %v827_v24 = vpack.c.bf16 %v751_v16, %v747_v10 }
 0x1e7   :  { %v2905_v37 = vadd.f32 %v2904_v35, %v2903_v23  ;;  %v3824_v38 = vadd.f32 %v2902_v22, %v3750_v17  ;;  %v429_v22 = vpop.f32.mrb[52].mxu0 }
 0x1e8   :  { %v430_v25 = vadd.f32 %v429_v22, %v3712_v62  ;;  %v431_v35 = vpop.f32.mrb[53].mxu0  ;;  %1106 = vmatprep.mubr.bf16.mxu0 %v828_v21 }
 0x1e9   :  { %v1466_v45 = vsel %vm1435_vm1, %v3824_v38, -inf  ;;  %v3830_v48 = vadd.f32 %v2905_v37, %v3750_v17  ;;  %v432_v27 = vadd.f32 %v431_v35, %v3715_v63  ;;  %v433_v37 = vpop.f32.mrb[54].mxu0  ;;  %1107 = vmatmul.mubr.bf16.gmra.mrb[112].mxu0 %v827_v24 }
 0x1ea   :  { %1467 = vmax.xlane.f32.xlu0 %v1466_v45  ;;  %v435_v39 = vpop.f32.mrb[55].mxu0  ;;  %v755_v28 = vmax.f32 %v430_v25, 0.0  ;;  %v434_v36 = vadd.f32 %v433_v37, %v3712_v62 }
 0x1eb   :  { %v2906_v32 = vpop.f32.mrb[88].mxu1  ;;  %v1469_v53 = vsel %vm1435_vm1, %v3830_v48, -inf  ;;  %v756_v45 = vmax.f32 %v432_v27, 0.0  ;;  %v436_v50 = vadd.f32 %v435_v39, %v3715_v63  ;;  %v439_v58 = vpop.f32.mrb[56].mxu0 }
 0x1ec   :  { %v2907_v46 = vpop.f32.mrb[89].mxu1  ;;  %1470 = vmax.xlane.f32.xlu1 %v1469_v53  ;;  %v440_v61 = vadd.f32 %v439_v58, %v3712_v62  ;;  %v441_v29 = vpop.f32.mrb[57].mxu0 }
 0x1ed   :  { %v2908_v55 = vadd.f32 %v2907_v46, %v2906_v32  ;;  %v2909_v57 = vpop.f32.mrb[90].mxu1  ;;  %v760_v53 = vmax.f32 %v436_v50, 0.0  ;;  %v759_v46 = vmax.f32 %v434_v36, 0.0  ;;  %v442_v4 = vadd.f32 %v441_v29, %v3715_v63  ;;  %v443_v42 = vpop.f32.mrb[58].mxu0 }
 0x1ee   :  { %v2910_v60 = vpop.f32.mrb[91].mxu1  ;;  %v445_v44 = vpop.f32.mrb[59].mxu0  ;;  %v763_v12 = vmax.f32 %v440_v61, 0.0 }
 0x1ef   :  { %v2911_v1 = vadd.f32 %v2910_v60, %v2909_v57  ;;  %v3838_v3 = vadd.f32 %v2908_v55, %v3750_v17  ;;  %v832_v57 = vpack.c.bf16 %v760_v53, %v756_v45  ;;  %v831_v60 = vpack.c.bf16 %v759_v46, %v755_v28 }
 0x1f0   :  { %v764_v9 = vmax.f32 %v442_v4, 0.0  ;;  %v446_v10 = vadd.f32 %v445_v44, %v3715_v63 }
 0x1f1   :  { %v1472_v6 = vsel %vm1435_vm1, %v3838_v3, -inf  ;;  %v3844_v7 = vadd.f32 %v2911_v1, %v3750_v17  ;;  %1114 = vmatprep.mubr.bf16.mxu0 %v832_v57 }
 0x1f2   :  { %1473 = vmax.xlane.f32.xlu0 %v1472_v6  ;;  %1115 = vmatmul.mubr.bf16.gmra.mrb[116].mxu0 %v831_v60 }
 0x1f3   :  { %v2912_v13 = vpop.f32.mrb[92].mxu1  ;;  %v1475_v34 = vsel %vm1435_vm1, %v3844_v7, -inf }
 0x1f4   :  { %v2913_v15 = vpop.f32.mrb[93].mxu1  ;;  %1476 = vmax.xlane.f32.xlu1 %v1475_v34 }
 0x1f5   :  { %v2914_v18 = vadd.f32 %v2913_v15, %v2912_v13  ;;  %v2915_v20 = vpop.f32.mrb[94].mxu1  ;;  %v444_v13 = vadd.f32 %v443_v42, %v3712_v62  ;;  %v768_v15 = vmax.f32 %v446_v10, 0.0 }
 0x1f6   :  { %v2916_v23 = vpop.f32.mrb[95].mxu1 }
 0x1f7   :  { %v2917_v31 = vadd.f32 %v2916_v23, %v2915_v20  ;;  %v3852_v2 = vadd.f32 %v2914_v18, %v3750_v17  ;;  %v767_v18 = vmax.f32 %v444_v13, 0.0  ;;  %v836_v22 = vpack.c.bf16 %v768_v15, %v764_v9  ;;  %v449_v23 = vpop.f32.mrb[60].mxu0 }
 0x1f8   :  { %v450_v35 = vadd.f32 %v449_v23, %v3712_v62 }
 0x1f9   :  { %v1478_v41 = vsel %vm1435_vm1, %v3852_v2, -inf  ;;  %v3858_v43 = vadd.f32 %v2917_v31, %v3750_v17  ;;  %v835_v25 = vpack.c.bf16 %v767_v18, %v763_v12  ;;  %v451_v31 = vpop.f32.mrb[61].mxu0  ;;  %1122 = vmatprep.mubr.bf16.mxu0 %v836_v22 }
 0x1fa   :  { %1479 = vmax.xlane.f32.xlu0 %v1478_v41  ;;  %v452_v39 = vadd.f32 %v451_v31, %v3715_v63  ;;  %v453_v41 = vpop.f32.mrb[62].mxu0 }
 0x1fb   :  { %v2918_v51 = vpop.f32.mrb[96].mxu1  ;;  %v1481_v32 = vsel %vm1435_vm1, %v3858_v43, -inf  ;;  %v455_v45 = vpop.f32.mrb[63].mxu0  ;;  %1123 = vmatmul.mubr.bf16.gmra.mrb[120].mxu0 %v835_v25  ;;  %v454_v53 = vadd.f32 %v453_v41, %v3712_v62 }
 0x1fc   :  { %v2919_v54 = vpop.f32.mrb[97].mxu1  ;;  %1482 = vmax.xlane.f32.xlu1 %v1481_v32  ;;  %v772_v36 = vmax.f32 %v452_v39, 0.0  ;;  %v771_v32 = vmax.f32 %v450_v35, 0.0 }
 0x1fd   :  { %v2920_v47 = vadd.f32 %v2919_v54, %v2918_v51  ;;  %v2921_v55 = vpop.f32.mrb[98].mxu1  ;;  %v456_v51 = vadd.f32 %v455_v45, %v3715_v63  ;;  %v775_v57 = vmax.f32 %v454_v53, 0.0 }
 0x1fe   :  { %v2922_v59 = vpop.f32.mrb[99].mxu1 }
 0x1ff   :  { %v2923_v0 = vadd.f32 %v2922_v59, %v2921_v55  ;;  %v3866_v1 = vadd.f32 %v2920_v47, %v3750_v17  ;;  %v776_v47 = vmax.f32 %v456_v51, 0.0  ;;  %v839_v29 = vpack.c.bf16 %v775_v57, %v771_v32 }
 0x201   :  { %v1484_v6 = vsel %vm1435_vm1, %v3866_v1, -inf  ;;  %v3872_v8 = vadd.f32 %v2923_v0, %v3750_v17  ;;  %v840_v60 = vpack.c.bf16 %v776_v47, %v772_v36 }
 0x202   :  { %1485 = vmax.xlane.f32.xlu0 %v1484_v6 }
 0x203   :  { %v2924_v34 = vpop.f32.mrb[100].mxu1  ;;  %v1487_v14 = vsel %vm1435_vm1, %v3872_v8, -inf  ;;  %1130 = vmatprep.mubr.bf16.mxu0 %v840_v60 }
 0x204   :  { %v2925_v16 = vpop.f32.mrb[101].mxu1  ;;  %1488 = vmax.xlane.f32.xlu1 %v1487_v14  ;;  %1131 = vmatmul.mubr.bf16.gmra.mrb[124].mxu0 %v839_v29 }
 0x205   :  { %v2926_v20 = vadd.f32 %v2925_v16, %v2924_v34  ;;  %v2927_v21 = vpop.f32.mrb[102].mxu1 }
 0x206   :  { %v2928_v24 = vpop.f32.mrb[103].mxu1 }
 0x207   :  { %v2929_v27 = vadd.f32 %v2928_v24, %v2927_v21  ;;  %v3880_v37 = vadd.f32 %v2926_v20, %v3750_v17 }
 0x209   :  { %v1490_v50 = vsel %vm1435_vm1, %v3880_v37, -inf  ;;  %v3886_v28 = vadd.f32 %v2929_v27, %v3750_v17 }
 0x20a   :  { %1491 = vmax.xlane.f32.xlu0 %v1490_v50 }
 0x20b   :  { %v2930_v54 = vpop.f32.mrb[104].mxu1  ;;  %v1493_v46 = vsel %vm1435_vm1, %v3886_v28, -inf }
 0x20c   :  { %v2931_v55 = vpop.f32.mrb[105].mxu1  ;;  %1494 = vmax.xlane.f32.xlu1 %v1493_v46 }
 0x20d   :  { %v2932_v58 = vadd.f32 %v2931_v55, %v2930_v54  ;;  %v2933_v59 = vpop.f32.mrb[106].mxu1 }
 0x20e   :  { %v2934_v61 = vpop.f32.mrb[107].mxu1 }
 0x20f   :  { %v2935_v0 = vadd.f32 %v2934_v61, %v2933_v59  ;;  %v3893_v63 = vadd.f32 %v2932_v58, %v3750_v17 }
 0x211   :  { %v1496_v62 = vsel %vm1435_vm1, %v3893_v63, -inf  ;;  %v3898_v4 = vadd.f32 %v2935_v0, %v3750_v17 }
 0x212   :  { %1497 = vmax.xlane.f32.xlu0 %v1496_v62 }
 0x213   :  { %v2936_v42 = vpop.f32.mrb[108].mxu1  ;;  %v1499_v44 = vsel %vm1435_vm1, %v3898_v4, -inf }
 0x214   :  { %v2937_v6 = vpop.f32.mrb[109].mxu1  ;;  %1500 = vmax.xlane.f32.xlu1 %v1499_v44 }
 0x215   :  { %v2938_v9 = vadd.f32 %v2937_v6, %v2936_v42  ;;  %v2939_v10 = vpop.f32.mrb[110].mxu1 }
 0x216   :  { %v2940_v12 = vpop.f32.mrb[111].mxu1 }
 0x217   :  { %v2941_v13 = vadd.f32 %v2940_v12, %v2939_v10  ;;  %v3903_v34 = vadd.f32 %v2938_v9, %v3750_v17 }
 0x219   :  { %v1502_v14 = vsel %vm1435_vm1, %v3903_v34, -inf  ;;  %v3908_v15 = vadd.f32 %v2941_v13, %v3750_v17 }
 0x21a   :  { %1503 = vmax.xlane.f32.xlu0 %v1502_v14 }
 0x21b   :  { %v2942_v16 = vpop.f32.mrb[112].mxu1  ;;  %v1505_v18 = vsel %vm1435_vm1, %v3908_v15, -inf }
 0x21c   :  { %v2943_v20 = vpop.f32.mrb[113].mxu1  ;;  %1506 = vmax.xlane.f32.xlu1 %v1505_v18 }
 0x21d   :  { %v2944_v21 = vadd.f32 %v2943_v20, %v2942_v16  ;;  %v2945_v22 = vpop.f32.mrb[114].mxu1  ;;  %v1804_v20 = vld [vmem:[%s4304_s7] sm:$0xf] }
 0x21e   :  { %v2946_v23 = vpop.f32.mrb[115].mxu1  ;;  %3068 = vmatprep.subr.msk.bf16.mxu0 %vm1853_vm2, %v1804_v20 }
 0x21f   :  { %v2947_v24 = vadd.f32 %v2946_v23, %v2945_v22  ;;  %v3913_v25 = vadd.f32 %v2944_v21, %v3750_v17  ;;  %v3133_v21 = vld [vmem:[%s4305_s8] sm:$0xff]   ;;  %v1855_v22 = vsel %vm1853_vm2, %v1804_v20, 0 }
 0x220   :  { %3034 = vmatprep.subr.bf16.mxu1 %v3133_v21  ;;  %3001 = vmatpush3.bf16.msra.mxu0 %v1855_v22  ;;  %v3989_v20 = vld [vmem:[%s4301_s4] ss:$0 sm:$0xff]  ;;  %s3287_s4 = smov [#allocation2]  }
 0x221   :  { %v1508_v35 = vsel %vm1435_vm1, %v3913_v25, -inf  ;;  %v3918_v31 = vadd.f32 %v2947_v24, %v3750_v17  ;;  %3035 = vmatpush3.bf16.msra.mxu1 %v3133_v21  ;;  %s2449_s13 = sshll.u32 %s3287_s4, 4  ;;  %s2450_s13 = int_to_ptr.vmem [resolvable:$true] %s2449_s13 }
 0x222   :  { %1509 = vmax.xlane.f32.xlu0 %v1508_v35  ;;  %s3262_s14 = scalar_lea.vmem %s2450_s13, 2048  ;;  %p3267_p1 = scmp.lt.s32.totalorder %s2450_s13, %s2450_s13 }
 0x223   :  { %v2948_v27 = vpop.f32.mrb[116].mxu1  ;;  %v1511_v39 = vsel %vm1435_vm1, %v3918_v31, -inf  ;;  %p3263_p0 = scmp.ne.s32.totalorder %s2450_s13, %s3262_s14  ;;  %p3268_p2 = scmp.lt.s32.totalorder %s3262_s14, %s3262_s14 }
 0x224   :  { %v2949_v41 = vpop.f32.mrb[117].mxu1  ;;  %1512 = vmax.xlane.f32.xlu1 %v1511_v39 }
 0x225   :  { %v2950_v45 = vadd.f32 %v2949_v41, %v2948_v27  ;;  %v2951_v50 = vpop.f32.mrb[118].mxu1  ;;  %p3269_p3 = por %p3268_p2, %p3267_p1 }
 0x226   :  { %v2952_v36 = vpop.f32.mrb[119].mxu1 }
 0x227   :  { %v2953_v51 = vadd.f32 %v2952_v36, %v2951_v50  ;;  %v3923_v32 = vadd.f32 %v2950_v45, %v3750_v17  ;;  %p3270_p4 = pnand %p3269_p3, %p3263_p0 }
 0x229   :  { %v1514_v53 = vsel %vm1435_vm1, %v3923_v32, -inf  ;;  %v3928_v54 = vadd.f32 %v2953_v51, %v3750_v17 }
 0x22a   :  { %1515 = vmax.xlane.f32.xlu0 %v1514_v53 }
 0x22b   :  { %v2954_v46 = vpop.f32.mrb[120].mxu1  ;;  %v1517_v47 = vsel %vm1435_vm1, %v3928_v54, -inf }
 0x22c   :  { %v2955_v55 = vpop.f32.mrb[121].mxu1  ;;  %1518 = vmax.xlane.f32.xlu1 %v1517_v47 }
 0x22d   :  { %v2956_v57 = vadd.f32 %v2955_v55, %v2954_v46  ;;  %v2957_v58 = vpop.f32.mrb[122].mxu1 }
 0x22e   :  { %v2958_v59 = vpop.f32.mrb[123].mxu1 }
 0x22f   :  { %v2959_v60 = vadd.f32 %v2958_v59, %v2957_v58  ;;  %v3933_v61 = vadd.f32 %v2956_v57, %v3750_v17 }
 0x231   :  { %v1520_v29 = vsel %vm1435_vm1, %v3933_v61, -inf  ;;  %v3938_v0 = vadd.f32 %v2959_v60, %v3750_v17 }
 0x232   :  { %1521 = vmax.xlane.f32.xlu0 %v1520_v29 }
 0x233   :  { %v2960_v62 = vpop.f32.mrb[124].mxu1  ;;  %v1523_v42 = vsel %vm1435_vm1, %v3938_v0, -inf }
 0x234   :  { %v2961_v44 = vpop.f32.mrb[125].mxu1  ;;  %1524 = vmax.xlane.f32.xlu1 %v1523_v42 }
 0x235   :  { %v2962_v6 = vadd.f32 %v2961_v44, %v2960_v62  ;;  %v2963_v9 = vpop.f32.mrb[126].mxu1 }
 0x236   :  { %v2964_v10 = vpop.f32.mrb[127].mxu1 }
 0x237   :  { %v2965_v12 = vadd.f32 %v2964_v10, %v2963_v9  ;;  %v3943_v13 = vadd.f32 %v2962_v6, %v3750_v17 }
 0x239   :  { %v1526_v14 = vsel %vm1435_vm1, %v3943_v13, -inf  ;;  %v3948_v16 = vadd.f32 %v2965_v12, %v3750_v17 }
 0x23a   :  { %1527 = vmax.xlane.f32.xlu0 %v1526_v14 }
 0x23b   :  { %v1529_v18 = vsel %vm1435_vm1, %v3948_v16, -inf  ;;  %v2758_v14 = vpop.f32.mrb[64].mxu0 }
 0x23c   :  { %1530 = vmax.xlane.f32.xlu1 %v1529_v18 }
 0x24f   :  { %v1438_v17 = vpop.xlane.xlu0 %1437 }
 0x250   :  { %v1532_v23 = vsub.f32 %v3754_v26, %v1438_v17 }
 0x252   :  { %v1564_v24 = vmul.f32 1.442695, %v1532_v23 }
 0x253   :  { %v1441_v35 = vpop.xlane.xlu0 %1440 }
 0x254   :  { %3134 = vpow2.f32 %v1564_v24  ;;  %v1533_v27 = vsub.f32 %v3761_v40, %v1441_v35 }
 0x256   :  { %v1566_v39 = vmul.f32 1.442695, %v1533_v27 }
 0x257   :  { %v1444_v41 = vpop.xlane.xlu1 %1443 }
 0x258   :  { %3136 = vpow2.f32 %v1566_v39  ;;  %v1534_v45 = vsub.f32 %v3768_v56, %v1444_v41 }
 0x25a   :  { %v1568_v50 = vmul.f32 1.442695, %v1534_v45 }
 0x25b   :  { %v1447_v36 = vpop.xlane.xlu1 %1446 }
 0x25c   :  { %3138 = vpow2.f32 %v1568_v50  ;;  %v1535_v51 = vsub.f32 %v3775_v33, %v1447_v36 }
 0x25e   :  { %v3962_v53 = vpop.eup %3134  ;;  %v1570_v46 = vmul.f32 1.442695, %v1535_v51 }
 0x25f   :  { %v1450_v47 = vpop.xlane.xlu0 %1449  ;;  %v1628_v26 = vsel %vm1435_vm1, %v3962_v53, 0.0 }
 0x260   :  { %3140 = vpow2.f32 %v1570_v46  ;;  %v1536_v40 = vsub.f32 %v3782_v30, %v1450_v47  ;;  %1629 = vadd.xlane.f32.xlu0 %v1628_v26 }
 0x261   :  { %v1453_v55 = vpop.xlane.xlu1 %1452 }
 0x262   :  { %v3967_v57 = vpop.eup %3136  ;;  %v1572_v56 = vmul.f32 1.442695, %v1536_v40  ;;  %v1537_v58 = vsub.f32 %v3788_v19, %v1453_v55 }
 0x263   :  { %v1631_v33 = vsel %vm1435_vm1, %v3967_v57, 0.0 }
 0x264   :  { %3142 = vpow2.f32 %v1572_v56  ;;  %v1574_v59 = vmul.f32 1.442695, %v1537_v58  ;;  %1632 = vadd.xlane.f32.xlu1 %v1631_v33 }
 0x266   :  { %v3972_v60 = vpop.eup %3138  ;;  %3144 = vpow2.f32 %v1574_v59 }
 0x267   :  { %v1456_v29 = vpop.xlane.xlu0 %1455  ;;  %v1634_v30 = vsel %vm1435_vm1, %v3972_v60, 0.0 }
 0x268   :  { %v1538_v62 = vsub.f32 %v3795_v49, %v1456_v29  ;;  %1635 = vadd.xlane.f32.xlu0 %v1634_v30 }
 0x269   :  { %v1459_v42 = vpop.xlane.xlu1 %1458 }
 0x26a   :  { %v3977_v44 = vpop.eup %3140  ;;  %v1576_v19 = vmul.f32 1.442695, %v1538_v62  ;;  %v1539_v6 = vsub.f32 %v3802_v52, %v1459_v42  ;;  %v2759_v52 = vpop.f32.mrb[65].mxu0 }
 0x26b   :  { %v1637_v9 = vsel %vm1435_vm1, %v3977_v44, 0.0  ;;  %v2760_v17 = vadd.f32 %v2759_v52, %v2758_v14  ;;  %v2761_v23 = vpop.f32.mrb[66].mxu0 }
 0x26c   :  { %3146 = vpow2.f32 %v1576_v19  ;;  %v1578_v10 = vmul.f32 1.442695, %v1539_v6  ;;  %1638 = vadd.xlane.f32.xlu1 %v1637_v9  ;;  %v2762_v27 = vpop.f32.mrb[67].mxu0 }
 0x26d   :  { %v1013_v45 = vadd.f32 %v2760_v17, %v3989_v20  ;;  %v2763_v50 = vadd.f32 %v2762_v27, %v2761_v23  ;;  %v2764_v36 = vpop.f32.mrb[68].mxu0 }
 0x26e   :  { %v3982_v12 = vpop.eup %3142  ;;  %3148 = vpow2.f32 %v1578_v10  ;;  %v2765_v46 = vpop.f32.mrb[69].mxu0 }
 0x26f   :  { %v1462_v18 = vpop.xlane.xlu0 %1461  ;;  %v1640_v49 = vsel %vm1435_vm1, %v3982_v12, 0.0  ;;  %v2766_v47 = vadd.f32 %v2765_v46, %v2764_v36  ;;  %v2767_v26 = vpop.f32.mrb[70].mxu0 }
 0x270   :  { %v3991_v21 = vpop.eup %3144  ;;  %v1540_v22 = vsub.f32 %v3809_v5, %v1462_v18  ;;  %1641 = vadd.xlane.f32.xlu0 %v1640_v49  ;;  %v1016_v5 = vadd.f32 %v2763_v50, %v3989_v20  ;;  %v2768_v56 = vpop.f32.mrb[71].mxu0 }
 0x271   :  { %v1465_v24 = vpop.xlane.xlu1 %1464  ;;  %v1643_v35 = vsel %vm1435_vm1, %v3991_v21, 0.0  ;;  %v1021_v33 = vadd.f32 %v2766_v47, %v3989_v20  ;;  %v2769_v59 = vadd.f32 %v2768_v56, %v2767_v26 }
 0x272   :  { %v1580_v39 = vmul.f32 1.442695, %v1540_v22  ;;  %v1541_v41 = vsub.f32 %v3816_v11, %v1465_v24  ;;  %1644 = vadd.xlane.f32.xlu1 %v1643_v35  ;;  %v2018_v55 = vpack.c.bf16 %v1016_v5, %v1013_v45 }
 0x273   :  { %v1024_v19 = vadd.f32 %v2769_v59, %v3989_v20 }
 0x274   :  { %3150 = vpow2.f32 %v1580_v39  ;;  %v1582_v51 = vmul.f32 1.442695, %v1541_v41  ;;  %3036 = vmatprep.mubr.msk.bf16.mxu1 %vm2042_vm3, %v2018_v55 }
 0x275   :  { %v2019_v10 = vpack.c.bf16 %v1024_v19, %v1021_v33 }
 0x276   :  { %v3999_v40 = vpop.eup %3146  ;;  %3152 = vpow2.f32 %v1582_v51 }
 0x277   :  { %v1468_v58 = vpop.xlane.xlu0 %1467  ;;  %v1646_v11 = vsel %vm1435_vm1, %v3999_v40, 0.0  ;;  %3037 = vmatmul.mubr.msk.bf16.vlgmr.msra.gmra.mrb[128].mxu1 %vm2042_vm3, %v2019_v10 }
 0x278   :  { %v4004_v29 = vpop.eup %3148  ;;  %v1542_v30 = vsub.f32 %v3824_v38, %v1468_v58  ;;  %1647 = vadd.xlane.f32.xlu0 %v1646_v11  ;;  %v2770_v38 = vpop.f32.mrb[72].mxu0 }
 0x279   :  { %v1471_v62 = vpop.xlane.xlu1 %1470  ;;  %v1649_v42 = vsel %vm1435_vm1, %v4004_v29, 0.0  ;;  %v2771_v22 = vpop.f32.mrb[73].mxu0 }
 0x27a   :  { %v1584_v6 = vmul.f32 1.442695, %v1542_v30  ;;  %v1543_v9 = vsub.f32 %v3830_v48, %v1471_v62  ;;  %1650 = vadd.xlane.f32.xlu1 %v1649_v42  ;;  %v2773_v48 = vpop.f32.mrb[74].mxu0  ;;  %v2772_v45 = vadd.f32 %v2771_v22, %v2770_v38 }
 0x27b   :  { %v2774_v27 = vpop.f32.mrb[75].mxu0 }
 0x27c   :  { %3154 = vpow2.f32 %v1584_v6  ;;  %v1586_v14 = vmul.f32 1.442695, %v1543_v9  ;;  %v2775_v50 = vadd.f32 %v2774_v27, %v2773_v48  ;;  %v2776_v36 = vpop.f32.mrb[76].mxu0  ;;  %v1029_v5 = vadd.f32 %v2772_v45, %v3989_v20 }
 0x27d   :  { %v2777_v46 = vpop.f32.mrb[77].mxu0 }
 0x27e   :  { %v4013_v18 = vpop.eup %3150  ;;  %3156 = vpow2.f32 %v1586_v14  ;;  %v2779_v47 = vpop.f32.mrb[78].mxu0  ;;  %v2778_v11 = vadd.f32 %v2777_v46, %v2776_v36 }
 0x27f   :  { %v1474_v49 = vpop.xlane.xlu0 %1473  ;;  %v1652_v52 = vsel %vm1435_vm1, %v4013_v18, 0.0  ;;  %v2780_v56 = vpop.f32.mrb[79].mxu0 }
 0x280   :  { %v4017_v17 = vpop.eup %3152  ;;  %v1544_v23 = vsub.f32 %v3838_v3, %v1474_v49  ;;  %1653 = vadd.xlane.f32.xlu0 %v1652_v52  ;;  %v1032_v3 = vadd.f32 %v2775_v50, %v3989_v20  ;;  %v2781_v33 = vadd.f32 %v2780_v56, %v2779_v47  ;;  %v1037_v19 = vadd.f32 %v2778_v11, %v3989_v20  ;;  %v2782_v49 = vpop.f32.mrb[80].mxu0 }
 0x281   :  { %v1477_v24 = vpop.xlane.xlu1 %1476  ;;  %v1655_v35 = vsel %vm1435_vm1, %v4017_v17, 0.0 }
 0x282   :  { %v1588_v39 = vmul.f32 1.442695, %v1544_v23  ;;  %v1545_v41 = vsub.f32 %v3844_v7, %v1477_v24  ;;  %1656 = vadd.xlane.f32.xlu1 %v1655_v35  ;;  %v2020_v55 = vpack.c.bf16 %v1032_v3, %v1029_v5  ;;  %v1040_v6 = vadd.f32 %v2781_v33, %v3989_v20  ;;  %v2783_v23 = vpop.f32.mrb[81].mxu0 }
 0x283   :  { %v2785_v35 = vpop.f32.mrb[82].mxu0 }
 0x284   :  { %3158 = vpow2.f32 %v1588_v39  ;;  %v1590_v51 = vmul.f32 1.442695, %v1545_v41  ;;  %3040 = vmatprep.mubr.msk.bf16.mxu1 %vm2042_vm3, %v2020_v55  ;;  %v2021_v14 = vpack.c.bf16 %v1040_v6, %v1037_v19  ;;  %v2786_v41 = vpop.f32.mrb[83].mxu0 }
 0x285   :  { %v2788_v5 = vpop.f32.mrb[84].mxu0 }
 0x286   :  { %v4025_v26 = vpop.eup %3154  ;;  %3160 = vpow2.f32 %v1590_v51  ;;  %3041 = vmatmul.mubr.msk.bf16.gmra.mrb[132].mxu1 %vm2042_vm3, %v2021_v14  ;;  %v2787_v51 = vadd.f32 %v2786_v41, %v2785_v35  ;;  %v2789_v46 = vpop.f32.mrb[85].mxu0 }
 0x287   :  { %v1480_v58 = vpop.xlane.xlu0 %1479  ;;  %v1658_v7 = vsel %vm1435_vm1, %v4025_v26, 0.0  ;;  %v2790_v47 = vadd.f32 %v2789_v46, %v2788_v5  ;;  %v2791_v55 = vpop.f32.mrb[86].mxu0 }
 0x288   :  { %v4029_v59 = vpop.eup %3156  ;;  %v1546_v30 = vsub.f32 %v3852_v2, %v1480_v58  ;;  %1659 = vadd.xlane.f32.xlu0 %v1658_v7  ;;  %v2792_v7 = vpop.f32.mrb[87].mxu0 }
 0x289   :  { %v1483_v62 = vpop.xlane.xlu1 %1482  ;;  %v1661_v42 = vsel %vm1435_vm1, %v4029_v59, 0.0  ;;  %v1053_v33 = vadd.f32 %v2790_v47, %v3989_v20 }
 0x28a   :  { %v1592_v9 = vmul.f32 1.442695, %v1546_v30  ;;  %v1547_v10 = vsub.f32 %v3858_v43, %v1483_v62  ;;  %1662 = vadd.xlane.f32.xlu1 %v1661_v42  ;;  %v2784_v43 = vadd.f32 %v2783_v23, %v2782_v49  ;;  %v2793_v30 = vadd.f32 %v2792_v7, %v2791_v55 }
 0x28c   :  { %3162 = vpow2.f32 %v1592_v9  ;;  %v1594_v38 = vmul.f32 1.442695, %v1547_v10  ;;  %v1045_v36 = vadd.f32 %v2784_v43, %v3989_v20  ;;  %v1056_v9 = vadd.f32 %v2793_v30, %v3989_v20 }
 0x28e   :  { %v4039_v2 = vpop.eup %3158  ;;  %3164 = vpow2.f32 %v1594_v38  ;;  %v2023_v38 = vpack.c.bf16 %v1056_v9, %v1053_v33 }
 0x28f   :  { %v1486_v52 = vpop.xlane.xlu0 %1485  ;;  %v1664_v22 = vsel %vm1435_vm1, %v4039_v2, 0.0 }
 0x290   :  { %v4043_v48 = vpop.eup %3160  ;;  %v1548_v24 = vsub.f32 %v3866_v1, %v1486_v52  ;;  %1665 = vadd.xlane.f32.xlu0 %v1664_v22  ;;  %v1048_v1 = vadd.f32 %v2787_v51, %v3989_v20 }
 0x291   :  { %v1489_v27 = vpop.xlane.xlu1 %1488  ;;  %v1667_v39 = vsel %vm1435_vm1, %v4043_v48, 0.0 }
 0x292   :  { %v1596_v45 = vmul.f32 1.442695, %v1548_v24  ;;  %v1549_v50 = vsub.f32 %v3872_v8, %v1489_v27  ;;  %1668 = vadd.xlane.f32.xlu1 %v1667_v39  ;;  %v2022_v58 = vpack.c.bf16 %v1048_v1, %v1045_v36 }
 0x294   :  { %3166 = vpow2.f32 %v1596_v45  ;;  %v1598_v3 = vmul.f32 1.442695, %v1549_v50  ;;  %3044 = vmatprep.mubr.msk.bf16.mxu1 %vm2042_vm3, %v2022_v58 }
 0x295   :  { %3045 = vmatmul.mubr.msk.bf16.gmra.mrb[136].mxu1 %vm2042_vm3, %v2023_v38 }
 0x296   :  { %v4051_v56 = vpop.eup %3162  ;;  %3168 = vpow2.f32 %v1598_v3 }
 0x297   :  { %v1492_v11 = vpop.xlane.xlu0 %1491  ;;  %v1670_v8 = vsel %vm1435_vm1, %v4051_v56, 0.0 }
 0x298   :  { %v4056_v62 = vpop.eup %3164  ;;  %v1550_v42 = vsub.f32 %v3880_v37, %v1492_v11  ;;  %1671 = vadd.xlane.f32.xlu0 %v1670_v8  ;;  %v2794_v37 = vpop.f32.mrb[88].mxu0 }
 0x299   :  { %v1495_v19 = vpop.xlane.xlu1 %1494  ;;  %v1673_v6 = vsel %vm1435_vm1, %v4056_v62, 0.0  ;;  %v2795_v24 = vpop.f32.mrb[89].mxu0 }
 0x29a   :  { %v1600_v10 = vmul.f32 1.442695, %v1550_v42  ;;  %v1551_v14 = vsub.f32 %v3886_v28, %v1495_v19  ;;  %1674 = vadd.xlane.f32.xlu1 %v1673_v6  ;;  %v2796_v28 = vadd.f32 %v2795_v24, %v2794_v37  ;;  %v2797_v27 = vpop.f32.mrb[90].mxu0 }
 0x29b   :  { %v2798_v45 = vpop.f32.mrb[91].mxu0 }
 0x29c   :  { %3170 = vpow2.f32 %v1600_v10  ;;  %v1602_v49 = vmul.f32 1.442695, %v1551_v14  ;;  %v1061_v51 = vadd.f32 %v2796_v28, %v3989_v20  ;;  %v2799_v5 = vadd.f32 %v2798_v45, %v2797_v27  ;;  %v2800_v3 = vpop.f32.mrb[92].mxu0 }
 0x29d   :  { %v2801_v46 = vpop.f32.mrb[93].mxu0 }
 0x29e   :  { %v4065_v52 = vpop.eup %3166  ;;  %3172 = vpow2.f32 %v1602_v49  ;;  %v2802_v47 = vadd.f32 %v2801_v46, %v2800_v3  ;;  %v2803_v55 = vpop.f32.mrb[94].mxu0 }
 0x29f   :  { %v1498_v22 = vpop.xlane.xlu0 %1497  ;;  %v1676_v23 = vsel %vm1435_vm1, %v4065_v52, 0.0  ;;  %v2804_v11 = vpop.f32.mrb[95].mxu0 }
 0x2a0   :  { %v4069_v43 = vpop.eup %3168  ;;  %v1552_v35 = vsub.f32 %v3893_v63, %v1498_v22  ;;  %1677 = vadd.xlane.f32.xlu0 %v1676_v23  ;;  %v1064_v63 = vadd.f32 %v2799_v5, %v3989_v20  ;;  %v1069_v33 = vadd.f32 %v2802_v47, %v3989_v20  ;;  %v2805_v30 = vadd.f32 %v2804_v11, %v2803_v55 }
 0x2a1   :  { %v1501_v39 = vpop.xlane.xlu1 %1500  ;;  %v1679_v41 = vsel %vm1435_vm1, %v4069_v43, 0.0 }
 0x2a2   :  { %v1604_v50 = vmul.f32 1.442695, %v1552_v35  ;;  %v1553_v36 = vsub.f32 %v3898_v4, %v1501_v39  ;;  %1680 = vadd.xlane.f32.xlu1 %v1679_v41  ;;  %v2024_v7 = vpack.c.bf16 %v1064_v63, %v1061_v51  ;;  %v1072_v10 = vadd.f32 %v2805_v30, %v3989_v20 }
 0x2a4   :  { %3174 = vpow2.f32 %v1604_v50  ;;  %v1606_v1 = vmul.f32 1.442695, %v1553_v36  ;;  %3048 = vmatprep.mubr.msk.bf16.mxu1 %vm2042_vm3, %v2024_v7  ;;  %v2025_v49 = vpack.c.bf16 %v1072_v10, %v1069_v33 }
 0x2a6   :  { %v4077_v58 = vpop.eup %3170  ;;  %3176 = vpow2.f32 %v1606_v1  ;;  %3049 = vmatmul.mubr.msk.bf16.gmra.mrb[140].mxu1 %vm2042_vm3, %v2025_v49 }
 0x2a7   :  { %v1504_v8 = vpop.xlane.xlu0 %1503  ;;  %v1682_v4 = vsel %vm1435_vm1, %v4077_v58, 0.0 }
 0x2a8   :  { %v4082_v42 = vpop.eup %3172  ;;  %v1554_v19 = vsub.f32 %v3903_v34, %v1504_v8  ;;  %1683 = vadd.xlane.f32.xlu0 %v1682_v4  ;;  %v2806_v34 = vpop.f32.mrb[96].mxu0 }
 0x2a9   :  { %v1507_v6 = vpop.xlane.xlu1 %1506  ;;  %v1685_v9 = vsel %vm1435_vm1, %v4082_v42, 0.0  ;;  %v2807_v35 = vpop.f32.mrb[97].mxu0 }
 0x2aa   :  { %v1608_v14 = vmul.f32 1.442695, %v1554_v19  ;;  %v1555_v38 = vsub.f32 %v3908_v15, %v1507_v6  ;;  %1686 = vadd.xlane.f32.xlu1 %v1685_v9  ;;  %v2808_v15 = vadd.f32 %v2807_v35, %v2806_v34  ;;  %v2809_v39 = vpop.f32.mrb[98].mxu0 }
 0x2ab   :  { %v2810_v50 = vpop.f32.mrb[99].mxu0 }
 0x2ac   :  { %3178 = vpow2.f32 %v1608_v14  ;;  %v1610_v37 = vmul.f32 1.442695, %v1555_v38  ;;  %v1077_v5 = vadd.f32 %v2808_v15, %v3989_v20  ;;  %v2811_v3 = vadd.f32 %v2810_v50, %v2809_v39  ;;  %v2812_v1 = vpop.f32.mrb[100].mxu0 }
 0x2ad   :  { %v2813_v46 = vpop.f32.mrb[101].mxu0 }
 0x2ae   :  { %v4091_v22 = vpop.eup %3174  ;;  %3180 = vpow2.f32 %v1610_v37  ;;  %v2814_v47 = vadd.f32 %v2813_v46, %v2812_v1  ;;  %v2815_v55 = vpop.f32.mrb[102].mxu0 }
 0x2af   :  { %v1510_v23 = vpop.xlane.xlu0 %1509  ;;  %v1688_v24 = vsel %vm1435_vm1, %v4091_v22, 0.0  ;;  %v2816_v8 = vpop.f32.mrb[103].mxu0 }
 0x2b0   :  { %v4095_v28 = vpop.eup %3176  ;;  %v1556_v27 = vsub.f32 %v3913_v25, %v1510_v23  ;;  %1689 = vadd.xlane.f32.xlu0 %v1688_v24  ;;  %v1080_v25 = vadd.f32 %v2811_v3, %v3989_v20  ;;  %v1085_v33 = vadd.f32 %v2814_v47, %v3989_v20  ;;  %v2817_v30 = vadd.f32 %v2816_v8, %v2815_v55 }
 0x2b1   :  { %v1513_v41 = vpop.xlane.xlu1 %1512  ;;  %v1691_v45 = vsel %vm1435_vm1, %v4095_v28, 0.0 }
 0x2b2   :  { %v1612_v36 = vmul.f32 1.442695, %v1556_v27  ;;  %v1557_v51 = vsub.f32 %v3918_v31, %v1513_v41  ;;  %1692 = vadd.xlane.f32.xlu1 %v1691_v45  ;;  %v2026_v11 = vpack.c.bf16 %v1080_v25, %v1077_v5  ;;  %v1088_v14 = vadd.f32 %v2817_v30, %v3989_v20 }
 0x2b4   :  { %3182 = vpow2.f32 %v1612_v36  ;;  %v1614_v63 = vmul.f32 1.442695, %v1557_v51  ;;  %3052 = vmatprep.mubr.msk.bf16.mxu1 %vm2042_vm3, %v2026_v11  ;;  %v2027_v37 = vpack.c.bf16 %v1088_v14, %v1085_v33 }
 0x2b6   :  { %v4103_v7 = vpop.eup %3178  ;;  %3184 = vpow2.f32 %v1614_v63  ;;  %3053 = vmatmul.mubr.msk.bf16.gmra.mrb[144].mxu1 %vm2042_vm3, %v2027_v37 }
 0x2b7   :  { %v1516_v4 = vpop.xlane.xlu0 %1515  ;;  %v1694_v31 = vsel %vm1435_vm1, %v4103_v7, 0.0 }
 0x2b8   :  { %v4108_v19 = vpop.eup %3180  ;;  %v1558_v6 = vsub.f32 %v3923_v32, %v1516_v4  ;;  %1695 = vadd.xlane.f32.xlu0 %v1694_v31  ;;  %v2818_v32 = vpop.f32.mrb[104].mxu0 }
 0x2b9   :  { %v1519_v9 = vpop.xlane.xlu1 %1518  ;;  %v1697_v10 = vsel %vm1435_vm1, %v4108_v19, 0.0  ;;  %v2819_v27 = vpop.f32.mrb[105].mxu0 }
 0x2ba   :  { %v1616_v38 = vmul.f32 1.442695, %v1558_v6  ;;  %v1559_v49 = vsub.f32 %v3928_v54, %v1519_v9  ;;  %1698 = vadd.xlane.f32.xlu1 %v1697_v10  ;;  %v2820_v54 = vadd.f32 %v2819_v27, %v2818_v32  ;;  %v2821_v41 = vpop.f32.mrb[106].mxu0 }
 0x2bb   :  { %v2822_v36 = vpop.f32.mrb[107].mxu0 }
 0x2bc   :  { %3186 = vpow2.f32 %v1616_v38  ;;  %v1618_v34 = vmul.f32 1.442695, %v1559_v49  ;;  %v1093_v3 = vadd.f32 %v2820_v54, %v3989_v20  ;;  %v2823_v1 = vadd.f32 %v2822_v36, %v2821_v41  ;;  %v2824_v63 = vpop.f32.mrb[108].mxu0 }
 0x2bd   :  { %v2825_v46 = vpop.f32.mrb[109].mxu0 }
 0x2be   :  { %v4117_v23 = vpop.eup %3182  ;;  %3188 = vpow2.f32 %v1618_v34  ;;  %v2826_v47 = vadd.f32 %v2825_v46, %v2824_v63  ;;  %v2827_v55 = vpop.f32.mrb[110].mxu0 }
 0x2bf   :  { %v1522_v24 = vpop.xlane.xlu0 %1521  ;;  %v1700_v35 = vsel %vm1435_vm1, %v4117_v23, 0.0  ;;  %v2828_v4 = vpop.f32.mrb[111].mxu0 }
 0x2c0   :  { %v4121_v15 = vpop.eup %3184  ;;  %v1560_v39 = vsub.f32 %v3933_v61, %v1522_v24  ;;  %1701 = vadd.xlane.f32.xlu0 %v1700_v35  ;;  %v1096_v61 = vadd.f32 %v2823_v1, %v3989_v20  ;;  %v1101_v33 = vadd.f32 %v2826_v47, %v3989_v20  ;;  %v2829_v30 = vadd.f32 %v2828_v4, %v2827_v55 }
 0x2c1   :  { %v1525_v45 = vpop.xlane.xlu1 %1524  ;;  %v1703_v50 = vsel %vm1435_vm1, %v4121_v15, 0.0 }
 0x2c2   :  { %v1620_v51 = vmul.f32 1.442695, %v1560_v39  ;;  %v1561_v5 = vsub.f32 %v3938_v0, %v1525_v45  ;;  %1704 = vadd.xlane.f32.xlu1 %v1703_v50  ;;  %v2028_v8 = vpack.c.bf16 %v1096_v61, %v1093_v3  ;;  %v1104_v38 = vadd.f32 %v2829_v30, %v3989_v20 }
 0x2c4   :  { %3190 = vpow2.f32 %v1620_v51  ;;  %v1622_v25 = vmul.f32 1.442695, %v1561_v5  ;;  %3056 = vmatprep.mubr.msk.bf16.mxu1 %vm2042_vm3, %v2028_v8  ;;  %v2029_v34 = vpack.c.bf16 %v1104_v38, %v1101_v33 }
 0x2c6   :  { %v4129_v11 = vpop.eup %3186  ;;  %3192 = vpow2.f32 %v1622_v25  ;;  %3057 = vmatmul.mubr.msk.bf16.gmra.mrb[148].mxu1 %vm2042_vm3, %v2029_v34 }
 0x2c7   :  { %v1528_v31 = vpop.xlane.xlu0 %1527  ;;  %v1706_v0 = vsel %vm1435_vm1, %v4129_v11, 0.0 }
 0x2c8   :  { %v4134_v6 = vpop.eup %3188  ;;  %v1562_v9 = vsub.f32 %v3943_v13, %v1528_v31  ;;  %1707 = vadd.xlane.f32.xlu0 %v1706_v0  ;;  %v2830_v13 = vpop.f32.mrb[112].mxu0 }
 0x2c9   :  { %v1531_v10 = vpop.xlane.xlu1 %1530  ;;  %v1709_v14 = vsel %vm1435_vm1, %v4134_v6, 0.0  ;;  %v2831_v27 = vpop.f32.mrb[113].mxu0 }
 0x2ca   :  { %v1624_v49 = vmul.f32 1.442695, %v1562_v9  ;;  %v1563_v37 = vsub.f32 %v3948_v16, %v1531_v10  ;;  %1710 = vadd.xlane.f32.xlu1 %v1709_v14  ;;  %v2832_v54 = vadd.f32 %v2831_v27, %v2830_v13  ;;  %v2833_v41 = vpop.f32.mrb[114].mxu0 }
 0x2cb   :  { %v2834_v45 = vpop.f32.mrb[115].mxu0 }
 0x2cc   :  { %3194 = vpow2.f32 %v1624_v49  ;;  %v1626_v32 = vmul.f32 1.442695, %v1563_v37  ;;  %v1109_v50 = vadd.f32 %v2832_v54, %v3989_v20  ;;  %v2835_v36 = vadd.f32 %v2834_v45, %v2833_v41  ;;  %v2836_v51 = vpop.f32.mrb[116].mxu0 }
 0x2cd   :  { %v2837_v3 = vpop.f32.mrb[117].mxu0 }
 0x2ce   :  { %v4143_v24 = vpop.eup %3190  ;;  %3196 = vpow2.f32 %v1626_v32  ;;  %v1112_v5 = vadd.f32 %v2835_v36, %v3989_v20  ;;  %v2838_v1 = vadd.f32 %v2837_v3, %v2836_v51  ;;  %v2839_v63 = vpop.f32.mrb[118].mxu0 }
 0x2cf   :  { %v1712_v35 = vsel %vm1435_vm1, %v4143_v24, 0.0  ;;  %v2840_v46 = vpop.f32.mrb[119].mxu0 }
 0x2d0   :  { %v4147_v39 = vpop.eup %3192  ;;  %1713 = vadd.xlane.f32.xlu0 %v1712_v35  ;;  %v2030_v61 = vpack.c.bf16 %v1112_v5, %v1109_v50  ;;  %v1117_v55 = vadd.f32 %v2838_v1, %v3989_v20  ;;  %v2841_v8 = vadd.f32 %v2840_v46, %v2839_v63  ;;  %v2842_v30 = vpop.f32.mrb[120].mxu0 }
 0x2d1   :  { %v1715_v16 = vsel %vm1435_vm1, %v4147_v39, 0.0  ;;  %v2843_v9 = vpop.f32.mrb[121].mxu0 }
 0x2d2   :  { %1716 = vadd.xlane.f32.xlu1 %v1715_v16  ;;  %3060 = vmatprep.mubr.msk.bf16.mxu1 %vm2042_vm3, %v2030_v61  ;;  %v1120_v0 = vadd.f32 %v2841_v8, %v3989_v20  ;;  %v2844_v10 = vadd.f32 %v2843_v9, %v2842_v30  ;;  %v2845_v14 = vpop.f32.mrb[122].mxu0 }
 0x2d3   :  { %v2846_v38 = vpop.f32.mrb[123].mxu0 }
 0x2d4   :  { %v2031_v33 = vpack.c.bf16 %v1120_v0, %v1117_v55  ;;  %v1125_v49 = vadd.f32 %v2844_v10, %v3989_v20  ;;  %v2847_v37 = vadd.f32 %v2846_v38, %v2845_v14 }
 0x2d6   :  { %v4153_v25 = vpop.eup %3194  ;;  %3061 = vmatmul.mubr.msk.bf16.gmra.mrb[152].mxu1 %vm2042_vm3, %v2031_v33  ;;  %v1128_v32 = vadd.f32 %v2847_v37, %v3989_v20 }
 0x2d7   :  { %v1718_v47 = vsel %vm1435_vm1, %v4153_v25, 0.0  ;;  %v2848_v34 = vpop.f32.mrb[124].mxu0 }
 0x2d8   :  { %v4158_v4 = vpop.eup %3196  ;;  %1719 = vadd.xlane.f32.xlu0 %v1718_v47  ;;  %v2849_v13 = vpop.f32.mrb[125].mxu0  ;;  %v2032_v54 = vpack.c.bf16 %v1128_v32, %v1125_v49 }
 0x2d9   :  { %v1721_v31 = vsel %vm1435_vm1, %v4158_v4, 0.0  ;;  %v2850_v35 = vadd.f32 %v2849_v13, %v2848_v34  ;;  %v2851_v27 = vpop.f32.mrb[126].mxu0 }
 0x2da   :  { %1722 = vadd.xlane.f32.xlu1 %v1721_v31  ;;  %v2852_v41 = vpop.f32.mrb[127].mxu0  ;;  %3064 = vmatprep.mubr.msk.bf16.mxu1 %vm2042_vm3, %v2032_v54 }
 0x2db   :  { %v1133_v16 = vadd.f32 %v2850_v35, %v3989_v20  ;;  %v2853_v45 = vadd.f32 %v2852_v41, %v2851_v27 }
 0x2dd   :  { %v1136_v50 = vadd.f32 %v2853_v45, %v3989_v20 }
 0x2df   :  { %v2033_v36 = vpack.c.bf16 %v1136_v50, %v1133_v16 }
 0x2e1   :  { %3065 = vmatmul.mubr.msk.bf16.gmra.mrb[156].mxu1 %vm2042_vm3, %v2033_v36 }
 0x2ed   :  { %v1630_v51 = vpop.xlane.xlu0 %1629 }
 0x2ee   :  { %3198 = vrcp.f32 %v1630_v51 }
 0x2f1   :  { %v1633_v5 = vpop.xlane.xlu1 %1632 }
 0x2f2   :  { %3200 = vrcp.f32 %v1633_v5 }
 0x2f5   :  { %v1636_v3 = vpop.xlane.xlu0 %1635 }
 0x2f6   :  { %3202 = vrcp.f32 %v1636_v3 }
 0x2f8   :  { %v3199_v63 = vpop.eup %3198 }
 0x2f9   :  { %v1639_v1 = vpop.xlane.xlu1 %1638  ;;  %v1756_v47 = vmul.f32 %v3199_v63, %v3962_v53 }
 0x2fa   :  { %3204 = vrcp.f32 %v1639_v1 }
 0x2fc   :  { %v3201_v61 = vpop.eup %3200 }
 0x2fd   :  { %v1642_v46 = vpop.xlane.xlu0 %1641  ;;  %v1757_v55 = vmul.f32 %v3201_v61, %v3967_v57 }
 0x2fe   :  { %3206 = vrcp.f32 %v1642_v46 }
 0x2ff   :  { %v1645_v20 = vpop.xlane.xlu1 %1644  ;;  %v1788_v8 = vpack.c.bf16 %v1757_v55, %v1756_v47 }
 0x300   :  { %3208 = vrcp.f32 %v1645_v20  ;;  %v3203_v31 = vpop.eup %3202 }
 0x301   :  { %3002 = vmatprep.mubr.msk.bf16.mxu0 %vm1435_vm1, %v1788_v8  ;;  %v1758_v33 = vmul.f32 %v3203_v31, %v3972_v60 }
 0x304   :  { %v3205_v0 = vpop.eup %3204 }
 0x305   :  { %v1759_v30 = vmul.f32 %v3205_v0, %v3977_v44  ;;  %v1648_v9 = vpop.xlane.xlu0 %1647 }
 0x306   :  { %3210 = vrcp.f32 %v1648_v9 }
 0x307   :  { %v1789_v10 = vpack.c.bf16 %v1759_v30, %v1758_v33  ;;  %v1651_v14 = vpop.xlane.xlu1 %1650 }
 0x308   :  { %v3207_v38 = vpop.eup %3206  ;;  %3212 = vrcp.f32 %v1651_v14 }
 0x309   :  { %3003 = vmatmul.mubr.msk.bf16.vlgmr.msra.gmra.mrb[128].mxu0 %vm1435_vm1, %v1789_v10  ;;  %v1760_v57 = vmul.f32 %v3207_v38, %v3982_v12 }
 0x30a   :  { %v3209_v53 = vpop.eup %3208 }
 0x30b   :  { %v1761_v49 = vmul.f32 %v3209_v53, %v3991_v21 }
 0x30d   :  { %v1654_v37 = vpop.xlane.xlu0 %1653  ;;  %v1790_v34 = vpack.c.bf16 %v1761_v49, %v1760_v57 }
 0x30e   :  { %3214 = vrcp.f32 %v1654_v37 }
 0x30f   :  { %v1657_v32 = vpop.xlane.xlu1 %1656  ;;  %3006 = vmatprep.mubr.msk.bf16.mxu0 %vm1435_vm1, %v1790_v34 }
 0x310   :  { %v3211_v60 = vpop.eup %3210  ;;  %3216 = vrcp.f32 %v1657_v32 }
 0x311   :  { %v1762_v13 = vmul.f32 %v3211_v60, %v3999_v40 }
 0x312   :  { %v3213_v44 = vpop.eup %3212 }
 0x313   :  { %v1763_v35 = vmul.f32 %v3213_v44, %v4004_v29 }
 0x315   :  { %v1660_v27 = vpop.xlane.xlu0 %1659  ;;  %v1791_v54 = vpack.c.bf16 %v1763_v35, %v1762_v13 }
 0x316   :  { %3218 = vrcp.f32 %v1660_v27 }
 0x317   :  { %v1663_v41 = vpop.xlane.xlu1 %1662  ;;  %3007 = vmatmul.mubr.msk.bf16.gmra.mrb[132].mxu0 %vm1435_vm1, %v1791_v54 }
 0x318   :  { %v3215_v12 = vpop.eup %3214  ;;  %3220 = vrcp.f32 %v1663_v41 }
 0x319   :  { %v1764_v16 = vmul.f32 %v3215_v12, %v4013_v18 }
 0x31a   :  { %v3217_v21 = vpop.eup %3216 }
 0x31b   :  { %v1765_v45 = vmul.f32 %v3217_v21, %v4017_v17 }
 0x31d   :  { %v1666_v50 = vpop.xlane.xlu0 %1665  ;;  %v1792_v36 = vpack.c.bf16 %v1765_v45, %v1764_v16 }
 0x31e   :  { %3222 = vrcp.f32 %v1666_v50 }
 0x31f   :  { %v1669_v51 = vpop.xlane.xlu1 %1668  ;;  %3010 = vmatprep.mubr.msk.bf16.mxu0 %vm1435_vm1, %v1792_v36 }
 0x320   :  { %v3219_v40 = vpop.eup %3218  ;;  %3224 = vrcp.f32 %v1669_v51 }
 0x321   :  { %v1766_v5 = vmul.f32 %v3219_v40, %v4025_v26 }
 0x322   :  { %v3221_v29 = vpop.eup %3220 }
 0x323   :  { %v1767_v3 = vmul.f32 %v3221_v29, %v4029_v59 }
 0x325   :  { %v1672_v1 = vpop.xlane.xlu0 %1671  ;;  %v1793_v63 = vpack.c.bf16 %v1767_v3, %v1766_v5 }
 0x326   :  { %3226 = vrcp.f32 %v1672_v1 }
 0x327   :  { %v1675_v61 = vpop.xlane.xlu1 %1674  ;;  %3011 = vmatmul.mubr.msk.bf16.gmra.mrb[136].mxu0 %vm1435_vm1, %v1793_v63 }
 0x328   :  { %v3223_v18 = vpop.eup %3222  ;;  %3228 = vrcp.f32 %v1675_v61 }
 0x329   :  { %v1768_v46 = vmul.f32 %v3223_v18, %v4039_v2 }
 0x32a   :  { %v3225_v17 = vpop.eup %3224 }
 0x32b   :  { %v1769_v47 = vmul.f32 %v3225_v17, %v4043_v48 }
 0x32d   :  { %v1678_v55 = vpop.xlane.xlu0 %1677  ;;  %v1794_v20 = vpack.c.bf16 %v1769_v47, %v1768_v46 }
 0x32e   :  { %3230 = vrcp.f32 %v1678_v55 }
 0x32f   :  { %v1681_v8 = vpop.xlane.xlu1 %1680  ;;  %3014 = vmatprep.mubr.msk.bf16.mxu0 %vm1435_vm1, %v1794_v20 }
 0x330   :  { %v3227_v26 = vpop.eup %3226  ;;  %3232 = vrcp.f32 %v1681_v8 }
 0x331   :  { %v1770_v31 = vmul.f32 %v3227_v26, %v4051_v56 }
 0x332   :  { %v3229_v59 = vpop.eup %3228 }
 0x333   :  { %v1771_v0 = vmul.f32 %v3229_v59, %v4056_v62 }
 0x335   :  { %v1684_v33 = vpop.xlane.xlu0 %1683  ;;  %v1795_v30 = vpack.c.bf16 %v1771_v0, %v1770_v31 }
 0x336   :  { %3234 = vrcp.f32 %v1684_v33 }
 0x337   :  { %v1687_v9 = vpop.xlane.xlu1 %1686  ;;  %3015 = vmatmul.mubr.msk.bf16.gmra.mrb[140].mxu0 %vm1435_vm1, %v1795_v30 }
 0x338   :  { %v3231_v2 = vpop.eup %3230  ;;  %3236 = vrcp.f32 %v1687_v9 }
 0x339   :  { %v1772_v10 = vmul.f32 %v3231_v2, %v4065_v52 }
 0x33a   :  { %v3233_v48 = vpop.eup %3232 }
 0x33b   :  { %v1773_v14 = vmul.f32 %v3233_v48, %v4069_v43 }
 0x33d   :  { %v1690_v38 = vpop.xlane.xlu0 %1689  ;;  %v1796_v53 = vpack.c.bf16 %v1773_v14, %v1772_v10 }
 0x33e   :  { %3238 = vrcp.f32 %v1690_v38 }
 0x33f   :  { %v1693_v57 = vpop.xlane.xlu1 %1692  ;;  %3018 = vmatprep.mubr.msk.bf16.mxu0 %vm1435_vm1, %v1796_v53 }
 0x340   :  { %v3235_v56 = vpop.eup %3234  ;;  %3240 = vrcp.f32 %v1693_v57 }
 0x341   :  { %v1774_v49 = vmul.f32 %v3235_v56, %v4077_v58 }
 0x342   :  { %v3237_v62 = vpop.eup %3236 }
 0x343   :  { %v1775_v37 = vmul.f32 %v3237_v62, %v4082_v42 }
 0x345   :  { %v1696_v34 = vpop.xlane.xlu0 %1695  ;;  %v1797_v32 = vpack.c.bf16 %v1775_v37, %v1774_v49 }
 0x346   :  { %3242 = vrcp.f32 %v1696_v34 }
 0x347   :  { %v1699_v60 = vpop.xlane.xlu1 %1698  ;;  %3019 = vmatmul.mubr.msk.bf16.gmra.mrb[144].mxu0 %vm1435_vm1, %v1797_v32 }
 0x348   :  { %v3239_v52 = vpop.eup %3238  ;;  %3244 = vrcp.f32 %v1699_v60 }
 0x349   :  { %v1776_v44 = vmul.f32 %v3239_v52, %v4091_v22 }
 0x34a   :  { %v3241_v43 = vpop.eup %3240  ;;  %v4204_v42 = vpop.f32.mrb[128].mxu1 }
 0x34b   :  { %v1777_v13 = vmul.f32 %v3241_v43, %v4095_v28  ;;  %v4206_v41 = vpop.f32.mrb[129].mxu1 }
 0x34c   :  { %v4208_v21 = vpop.f32.mrb[130].mxu1 }
 0x34d   :  { %v1702_v35 = vpop.xlane.xlu0 %1701  ;;  %v1798_v27 = vpack.c.bf16 %v1777_v13, %v1776_v44  ;;  %v4212_v28 = vpop.f32.mrb[131].mxu1 }
 0x34e   :  { %3246 = vrcp.f32 %v1702_v35 }
 0x34f   :  { %v1705_v54 = vpop.xlane.xlu1 %1704  ;;  %3022 = vmatprep.mubr.msk.bf16.mxu0 %vm1435_vm1, %v1798_v27 }
 0x350   :  { %v3243_v58 = vpop.eup %3242  ;;  %3248 = vrcp.f32 %v1705_v54 }
 0x351   :  { %v1778_v16 = vmul.f32 %v3243_v58, %v4103_v7 }
 0x352   :  { %v3245_v12 = vpop.eup %3244 }
 0x353   :  { %v1779_v22 = vmul.f32 %v3245_v12, %v4108_v19 }
 0x355   :  { %v1708_v45 = vpop.xlane.xlu0 %1707  ;;  %v1799_v50 = vpack.c.bf16 %v1779_v22, %v1778_v16 }
 0x356   :  { %3250 = vrcp.f32 %v1708_v45 }
 0x357   :  { %v1711_v36 = vpop.xlane.xlu1 %1710  ;;  %3023 = vmatmul.mubr.msk.bf16.gmra.mrb[148].mxu0 %vm1435_vm1, %v1799_v50 }
 0x358   :  { %v3247_v51 = vpop.eup %3246  ;;  %3252 = vrcp.f32 %v1711_v36 }
 0x359   :  { %v1780_v29 = vmul.f32 %v3247_v51, %v4117_v23  ;;  %v3042_v63 = vpop.f32.mrb[132].mxu1 }
 0x35a   :  { %v3249_v40 = vpop.eup %3248  ;;  %v4218_v61 = vpop.f32.mrb[133].mxu1 }
 0x35b   :  { %v1781_v5 = vmul.f32 %v3249_v40, %v4121_v15  ;;  %v4220_v17 = vpop.f32.mrb[134].mxu1 }
 0x35c   :  { %v2144_v47 = vpop.f32.mrb[135].mxu1 }
 0x35d   :  { %v1714_v3 = vpop.xlane.xlu0 %1713  ;;  %v1800_v1 = vpack.c.bf16 %v1781_v5, %v1780_v29 }
 0x35e   :  { %3254 = vrcp.f32 %v1714_v3 }
 0x35f   :  { %v1717_v7 = vpop.xlane.xlu1 %1716  ;;  %3026 = vmatprep.mubr.msk.bf16.mxu0 %vm1435_vm1, %v1800_v1 }
 0x360   :  { %v3251_v19 = vpop.eup %3250  ;;  %3256 = vrcp.f32 %v1717_v7 }
 0x361   :  { %v1782_v46 = vmul.f32 %v3251_v19, %v4129_v11 }
 0x362   :  { %v3253_v18 = vpop.eup %3252 }
 0x363   :  { %v1783_v23 = vmul.f32 %v3253_v18, %v4134_v6 }
 0x365   :  { %v1720_v15 = vpop.xlane.xlu0 %1719  ;;  %v1801_v55 = vpack.c.bf16 %v1783_v23, %v1782_v46 }
 0x366   :  { %3258 = vrcp.f32 %v1720_v15 }
 0x367   :  { %v1723_v20 = vpop.xlane.xlu1 %1722  ;;  %3027 = vmatmul.mubr.msk.bf16.gmra.mrb[152].mxu0 %vm1435_vm1, %v1801_v55 }
 0x368   :  { %v3255_v8 = vpop.eup %3254  ;;  %3260 = vrcp.f32 %v1723_v20  ;;  %v3046_v33 = vpop.f32.mrb[136].mxu1 }
 0x369   :  { %v1784_v59 = vmul.f32 %v3255_v8, %v4143_v24  ;;  %v2157_v6 = vpop.f32.mrb[137].mxu1 }
 0x36a   :  { %v3257_v26 = vpop.eup %3256  ;;  %v3047_v9 = vpop.f32.mrb[138].mxu1 }
 0x36b   :  { %v1785_v31 = vmul.f32 %v3257_v26, %v4147_v39  ;;  %v2160_v10 = vpop.f32.mrb[139].mxu1 }
 0x36d   :  { %v1802_v0 = vpack.c.bf16 %v1785_v31, %v1784_v59 }
 0x36f   :  { %3030 = vmatprep.mubr.msk.bf16.mxu0 %vm1435_vm1, %v1802_v0 }
 0x370   :  { %v3259_v11 = vpop.eup %3258 }
 0x371   :  { %v1786_v2 = vmul.f32 %v3259_v11, %v4153_v25 }
 0x372   :  { %v3261_v30 = vpop.eup %3260 }
 0x373   :  { %v1787_v48 = vmul.f32 %v3261_v30, %v4158_v4 }
 0x375   :  { %v1803_v14 = vpack.c.bf16 %v1787_v48, %v1786_v2 }
 0x377   :  { %3031 = vmatmul.mubr.msk.bf16.gmra.mrb[156].mxu0 %vm1435_vm1, %v1803_v14 }
 0x379   :  { %v3050_v38 = vpop.f32.mrb[140].mxu1 }
 0x37a   :  { %v2173_v24 = vpop.f32.mrb[141].mxu1 }
 0x37b   :  { %v3051_v53 = vpop.f32.mrb[142].mxu1 }
 0x37c   :  { %v2176_v39 = vpop.f32.mrb[143].mxu1 }
 0x389   :  { %v4231_v57 = vpop.f32.mrb[144].mxu1 }
 0x38a   :  { %v4233_v56 = vpop.f32.mrb[145].mxu1 }
 0x38b   :  { %v4235_v62 = vpop.f32.mrb[146].mxu1 }
 0x38c   :  { %v4237_v49 = vpop.f32.mrb[147].mxu1 }
 0x399   :  { %v4239_v37 = vpop.f32.mrb[148].mxu1 }
 0x39a   :  { %v4241_v25 = vpop.f32.mrb[149].mxu1 }
 0x39b   :  { %v4243_v4 = vpop.f32.mrb[150].mxu1 }
 0x39c   :  { %v4245_v34 = vpop.f32.mrb[151].mxu1 }
 0x3a9   :  { %v4247_v32 = vpop.f32.mrb[152].mxu1 }
 0x3aa   :  { %v4249_v60 = vpop.f32.mrb[153].mxu1 }
 0x3ab   :  { %v4251_v52 = vpop.f32.mrb[154].mxu1 }
 0x3ac   :  { %v4253_v43 = vpop.f32.mrb[155].mxu1 }
 0x3b4   :  { %v4255_v44 = vpop.f32.mrb[156].mxu1 }
 0x3b5   :  { %v4257_v13 = vpop.f32.mrb[157].mxu1 }
 0x3b6   :  { %v4259_v35 = vpop.f32.mrb[158].mxu1 }
 0x3b7   :  { %v4261_v27 = vpop.f32.mrb[159].mxu1 }
 0x3dc   :  { %v3004_v54 = vpop.f32.mrb[128].mxu0 }
 0x3dd   :  { %v2254_v58 = vmul.f32 %v4204_v42, %v3004_v54  ;;  %v1891_v12 = vpop.f32.mrb[129].mxu0 }
 0x3de   :  { %v2252_v16 = vmul.f32 %v4206_v41, %v1891_v12  ;;  %v3005_v22 = vpop.f32.mrb[130].mxu0 }
 0x3df   :  { %v2255_v45 = vmul.f32 %v4208_v21, %v3005_v22  ;;  %v1894_v50 = vpop.f32.mrb[131].mxu0 }
 0x3e0   :  { %v2253_v36 = vmul.f32 %v4212_v28, %v1894_v50 }
 0x3e1   :  { %v2655_v51 = vpack.c.bf16 %v2255_v45, %v2254_v58 }
 0x3e2   :  { %v2650_v40 = vpack.c.bf16 %v2253_v36, %v2252_v16 }
 0x3e3   :  { %2727 = vst [vmem:[#allocation2 + $0x8] sm:$0xff] %v2655_v51  }
 0x3e4   :  { %2651 = vst [vmem:[#allocation2] sm:$0xff] %v2650_v40  }
 0x3ea   :  { %v3008_v29 = vpop.f32.mrb[132].mxu0 }
 0x3eb   :  { %v2258_v5 = vmul.f32 %v3042_v63, %v3008_v29  ;;  %v1907_v3 = vpop.f32.mrb[133].mxu0 }
 0x3ec   :  { %v2256_v1 = vmul.f32 %v4218_v61, %v1907_v3  ;;  %v3009_v7 = vpop.f32.mrb[134].mxu0 }
 0x3ed   :  { %v2259_v42 = vmul.f32 %v4220_v17, %v3009_v7  ;;  %v1910_v19 = vpop.f32.mrb[135].mxu0 }
 0x3ee   :  { %v2257_v41 = vmul.f32 %v2144_v47, %v1910_v19 }
 0x3ef   :  { %v2665_v18 = vpack.c.bf16 %v2259_v42, %v2258_v5 }
 0x3f0   :  { %v2660_v46 = vpack.c.bf16 %v2257_v41, %v2256_v1 }
 0x3f1   :  { %2729 = vst [vmem:[#allocation2 + $0x18] sm:$0xff] %v2665_v18  }
 0x3f2   :  { %2728 = vst [vmem:[#allocation2 + $0x10] sm:$0xff] %v2660_v46  }
 0x3fa   :  { %v3012_v21 = vpop.f32.mrb[136].mxu0 }
 0x3fb   :  { %v2262_v28 = vmul.f32 %v3046_v33, %v3012_v21  ;;  %v1923_v23 = vpop.f32.mrb[137].mxu0 }
 0x3fc   :  { %v2260_v15 = vmul.f32 %v2157_v6, %v1923_v23  ;;  %v3013_v55 = vpop.f32.mrb[138].mxu0 }
 0x3fd   :  { %v2263_v20 = vmul.f32 %v3047_v9, %v3013_v55  ;;  %v1926_v8 = vpop.f32.mrb[139].mxu0 }
 0x3fe   :  { %v2261_v63 = vmul.f32 %v2160_v10, %v1926_v8 }
 0x3ff   :  { %v2675_v26 = vpack.c.bf16 %v2263_v20, %v2262_v28 }
 0x400   :  { %v2670_v59 = vpack.c.bf16 %v2261_v63, %v2260_v15 }
 0x401   :  { %2731 = vst [vmem:[#allocation2 + $0x28] sm:$0xff] %v2675_v26  }
 0x402   :  { %2730 = vst [vmem:[#allocation2 + $0x20] sm:$0xff] %v2670_v59  }
 0x40a   :  { %v3016_v61 = vpop.f32.mrb[140].mxu0 }
 0x40b   :  { %v2266_v17 = vmul.f32 %v3050_v38, %v3016_v61  ;;  %v1939_v31 = vpop.f32.mrb[141].mxu0 }
 0x40c   :  { %v2264_v47 = vmul.f32 %v2173_v24, %v1939_v31  ;;  %v3017_v0 = vpop.f32.mrb[142].mxu0 }
 0x40d   :  { %v2267_v11 = vmul.f32 %v3051_v53, %v3017_v0  ;;  %v1942_v30 = vpop.f32.mrb[143].mxu0 }
 0x40e   :  { %v2265_v2 = vmul.f32 %v2176_v39, %v1942_v30 }
 0x40f   :  { %v2685_v48 = vpack.c.bf16 %v2267_v11, %v2266_v17 }
 0x410   :  { %v2680_v33 = vpack.c.bf16 %v2265_v2, %v2264_v47 }
 0x411   :  { %2733 = vst [vmem:[#allocation2 + $0x38] sm:$0xff] %v2685_v48  }
 0x412   :  { %2732 = vst [vmem:[#allocation2 + $0x30] sm:$0xff] %v2680_v33  }
 0x41a   :  { %v3020_v6 = vpop.f32.mrb[144].mxu0 }
 0x41b   :  { %v2270_v9 = vmul.f32 %v4231_v57, %v3020_v6  ;;  %v1955_v10 = vpop.f32.mrb[145].mxu0 }
 0x41c   :  { %v2268_v14 = vmul.f32 %v4233_v56, %v1955_v10  ;;  %v3021_v54 = vpop.f32.mrb[146].mxu0 }
 0x41d   :  { %v2271_v58 = vmul.f32 %v4235_v62, %v3021_v54  ;;  %v1958_v38 = vpop.f32.mrb[147].mxu0 }
 0x41e   :  { %v2269_v24 = vmul.f32 %v4237_v49, %v1958_v38 }
 0x41f   :  { %v2695_v12 = vpack.c.bf16 %v2271_v58, %v2270_v9 }
 0x420   :  { %v2690_v53 = vpack.c.bf16 %v2269_v24, %v2268_v14 }
 0x421   :  { %2735 = vst [vmem:[#allocation2 + $0x48] sm:$0xff] %v2695_v12  }
 0x422   :  { %2734 = vst [vmem:[#allocation2 + $0x40] sm:$0xff] %v2690_v53  }
 0x42a   :  { %v3024_v39 = vpop.f32.mrb[148].mxu0 }
 0x42b   :  { %v2274_v16 = vmul.f32 %v4239_v37, %v3024_v39  ;;  %v1971_v22 = vpop.f32.mrb[149].mxu0 }
 0x42c   :  { %v2272_v45 = vmul.f32 %v4241_v25, %v1971_v22  ;;  %v3025_v57 = vpop.f32.mrb[150].mxu0 }
 0x42d   :  { %v2275_v50 = vmul.f32 %v4243_v4, %v3025_v57  ;;  %v1974_v56 = vpop.f32.mrb[151].mxu0 }
 0x42e   :  { %v2273_v36 = vmul.f32 %v4245_v34, %v1974_v56 }
 0x42f   :  { %v2705_v62 = vpack.c.bf16 %v2275_v50, %v2274_v16 }
 0x430   :  { %v2700_v51 = vpack.c.bf16 %v2273_v36, %v2272_v45 }
 0x431   :  { %2737 = vst [vmem:[#allocation2 + $0x58] sm:$0xff] %v2705_v62  }
 0x432   :  { %2736 = vst [vmem:[#allocation2 + $0x50] sm:$0xff] %v2700_v51  }
 0x43a   :  { %v3028_v49 = vpop.f32.mrb[152].mxu0 }
 0x43b   :  { %v2278_v40 = vmul.f32 %v4247_v32, %v3028_v49  ;;  %v1987_v29 = vpop.f32.mrb[153].mxu0 }
 0x43c   :  { %v2276_v5 = vmul.f32 %v4249_v60, %v1987_v29  ;;  %v3029_v37 = vpop.f32.mrb[154].mxu0 }
 0x43d   :  { %v2279_v3 = vmul.f32 %v4251_v52, %v3029_v37  ;;  %v1990_v25 = vpop.f32.mrb[155].mxu0 }
 0x43e   :  { %v2277_v1 = vmul.f32 %v4253_v43, %v1990_v25 }
 0x43f   :  { %v2715_v4 = vpack.c.bf16 %v2279_v3, %v2278_v40 }
 0x440   :  { %v2710_v7 = vpack.c.bf16 %v2277_v1, %v2276_v5 }
 0x441   :  { %2739 = vst [vmem:[#allocation2 + $0x68] sm:$0xff] %v2715_v4  }
 0x442   :  { %2738 = vst [vmem:[#allocation2 + $0x60] sm:$0xff] %v2710_v7  }
 0x44a   :  { %v3032_v34 = vpop.f32.mrb[156].mxu0 }
 0x44b   :  { %v2282_v42 = vmul.f32 %v4255_v44, %v3032_v34  ;;  %v2003_v19 = vpop.f32.mrb[157].mxu0 }
 0x44c   :  { %v2280_v41 = vmul.f32 %v4257_v13, %v2003_v19  ;;  %v3033_v32 = vpop.f32.mrb[158].mxu0 }
 0x44d   :  { %v2283_v60 = vmul.f32 %v4259_v35, %v3033_v32  ;;  %v2006_v18 = vpop.f32.mrb[159].mxu0 }
 0x44e   :  { %v2281_v52 = vmul.f32 %v4261_v27, %v2006_v18 }
 0x44f   :  { %v2725_v46 = vpack.c.bf16 %v2283_v60, %v2282_v42 }
 0x450   :  { %v2720_v43 = vpack.c.bf16 %v2281_v52, %v2280_v41 }
 0x451   :  { %2741 = vst [vmem:[#allocation2 + $0x78] sm:$0xff] %v2725_v46  }
 0x452   :  { %2740 = vst [vmem:[#allocation2 + $0x70] sm:$0xff] %v2720_v43  }
 0x453   :  { %3273 = shalt.err (!%p3270_p4)
}
 0x454   :  { %s3274_s17 = scalar_lea.hbm %s4306_s9, 2048 }
 0x455   :  { %p3275_p5 = scmp.ne.s32.totalorder %s4306_s9, %s3274_s17  ;;  %p3278_p6 = scmp.lt.u32.totalorder %s3274_s17, %s4306_s9 }
 0x457   :  { %p3280_p7 = pnand %p3278_p6, %p3275_p5 }
 0x459   :  { %3283 = shalt.err (!%p3280_p7)
}
 0x45a   :  { %s3288_s21 = smov 64   ;;  %s3289_s22 = smov 4  }
 0x45b   :  { %2455 = dma.vmem_to_hbm [thread:$0]  %s2450_s13, 2048, %s4306_s9, [#allocation3], %s3288_s21, %s3288_s21, %s3289_s22  }
 0x45c   :  { %3284 = dma.done.wait [#allocation3], 2048  }
 0x45d   :  { %3285 = vsyncadd [#allocation3], 4294965248 }
 0x45e   :  { %2459 = vsyncpa [#allocation3], 1 }

</bundles_post_ra>
